<compile_context>
chip_gen: v5e
topology: v5e:2x2
jax: 0.10.0
libtpu: 0.0.40
codegen_flags: <defaults>
</compile_context>

<pallas_src>
import jax
import jax.numpy as jnp
import numpy as np
from jax.experimental import pallas as pl
from jax.experimental.pallas import tpu as pltpu

EMBEDDING_DIM = 16
HIDDEN_SIZE = 40
INPUT_SIZE = 10        # vocab size
OUTPUT_SIZE = 1

GATE_LANES = 128       # lanes reserved per gate (H=40 <= 128)
VOCAB_PAD = 16         # padded vocab rows for the one-hot matmul
BATCH_TILE = 8         # sublane count -> pad batch to a multiple of 8


# --------------------------------------------------------------------------
# Kernel
# --------------------------------------------------------------------------
def lstm_fused_kernel(idx_ref, embproj_ref, whh_ref, wfc_ref, bfc_ref,
                      out_ref, xproj_ref):
    """Fused embedding-projection -> LSTM (full sequence) -> FC head.

    idx_ref     : (T*Bp, 1)  int32  time-major token ids, batch padded to Bp
    embproj_ref : (Vp, 4*GL) f32    precomputed emb @ W_ih + (b_ih + b_hh),
                                    gate order [i|f|o|g], lane-padded to GL
    whh_ref     : (GL, 4*GL) f32    W_hh^T, rows >= H zero, gates [i|f|o|g]
    wfc_ref     : (GL, GL)   f32    FC weight, only [:H, :1] nonzero
    bfc_ref     : (1, GL)    f32    FC bias, only lane 0 nonzero
    out_ref     : (Bp, GL)   f32    logits in lane 0, rows < B valid
    xproj_ref   : (T*Bp, 4*GL) f32  VMEM scratch for the per-step gate input
    """
    Bp, GL = out_ref.shape
    TBp = idx_ref.shape[0]
    T = TBp // Bp
    Vp = embproj_ref.shape[0]
    G3 = 3 * GL

    # ---- Input projection for ALL time steps (one small MXU pass) ----
    #   xproj[t*Bp + b] = onehot(idx[t, b]) @ (emb @ W_ih + b)
    # Written to VMEM scratch so it is NOT held live across the unrolled loop.
    onehot = (idx_ref[...] ==
              jax.lax.broadcasted_iota(jnp.int32, (TBp, Vp), 1)
              ).astype(jnp.float32)                                  # (TBp, Vp)
    xproj_ref[...] = jnp.dot(onehot, embproj_ref[...],
                             preferred_element_type=jnp.float32)     # (TBp, 4GL)

    h = jnp.zeros((Bp, GL), jnp.float32)
    c = jnp.zeros((Bp, GL), jnp.float32)

    # ---- Fully-unrolled recurrence (T is a static Python int) ----
    # Per step only the (Bp, 4GL) gate slab + h/c live as values; x_proj and
    # W_hh are streamed from VMEM refs, avoiding register-file spills.
    # Slices are static and aligned to 8 sublanes / 128 lanes.
    for t in range(T):
        gates = (xproj_ref[pl.ds(t * Bp, Bp), :]
                 + jnp.dot(h, whh_ref[...], preferred_element_type=jnp.float32))
        # Gate order [i | f | o | g]: one contiguous sigmoid, one tanh.
        sig = jax.nn.sigmoid(gates[:, :G3])                          # (Bp, 3GL)
        g_g = jnp.tanh(gates[:, G3:])                                # (Bp, GL)
        i_g = sig[:, 0 * GL:1 * GL]
        f_g = sig[:, 1 * GL:2 * GL]
        o_g = sig[:, 2 * GL:3 * GL]
        c = f_g * c + i_g * g_g
        h = o_g * jnp.tanh(c)
        # Padded lanes stay exactly zero: padded W_hh / embproj columns of the
        # g-gate are zero -> g=0 there, so c stays 0 and h = sigmoid(0)*0 = 0.

    # ---- FC head on the final hidden state (lane-dense (Bp, GL) store) ----
    out_ref[...] = (jnp.dot(h, wfc_ref[...],
                            preferred_element_type=jnp.float32)
                    + bfc_ref[...])


# --------------------------------------------------------------------------
# Parameter preparation (natural PyTorch-like shapes -> padded kernel layout)
# --------------------------------------------------------------------------
def _lane_pad_gates(w, gate_lanes):
    """(in_dim, 4H) in source gate order [i,f,g,o] -> (in_dim, 4*gate_lanes)
    in kernel gate order [i,f,o,g]; gate slot d occupies lanes
    [d*GL, d*GL + H), remaining lanes zero."""
    in_dim, four_h = w.shape
    h = four_h // 4
    out = jnp.zeros((in_dim, 4 * gate_lanes), w.dtype)
    src_order = (0, 1, 3, 2)   # dest slot d <- source gate src_order[d]
    for d, s in enumerate(src_order):
        out = out.at[:, d * gate_lanes:d * gate_lanes + h].set(
            w[:, s * h:(s + 1) * h])
    return out


def prepare_kernel_params(params, gate_lanes=GATE_LANES, vocab_pad=VOCAB_PAD):
    """Done once per set of weights (not per forward call).

    All weight-only math lives here:
      embproj[v] = emb[v] @ W_ih + (b_ih + b_hh)
    Folding the bias into the table is exact because every one-hot row used in
    the kernel sums to exactly 1 (all token ids must be in [0, V); padded
    batch rows are filled with index 0, which is a valid row).
    """
    emb, w_ih, w_hh, b, w_fc, b_fc = (params["emb"], params["w_ih"],
                                      params["w_hh"], params["b"],
                                      params["w_fc"], params["b_fc"])
    V, E = emb.shape
    H = w_hh.shape[0]
    GL = gate_lanes
    assert H <= GL and V <= vocab_pad and E == w_ih.shape[0]

    emb_proj = emb @ w_ih + b                                         # (V, 4H)
    embproj_p = jnp.zeros((vocab_pad, 4 * GL), jnp.float32).at[:V].set(
        _lane_pad_gates(emb_proj, GL))                                # (Vp,4GL)
    whh_p = jnp.zeros((GL, 4 * GL), jnp.float32).at[:H].set(
        _lane_pad_gates(w_hh, GL))                                    # (GL,4GL)
    wfc_p = jnp.zeros((GL, GL), jnp.float32).at[:H, :w_fc.shape[1]].set(w_fc)
    bfc_p = jnp.zeros((1, GL), jnp.float32).at[:, :b_fc.shape[1]].set(b_fc)
    return (embproj_p, whh_p, wfc_p, bfc_p)


# --------------------------------------------------------------------------
# Forward wrapper
# --------------------------------------------------------------------------
def lstm_classifier_forward(x_idx, kernel_params):
    """x_idx: int (B, T) token indices in [0, INPUT_SIZE). Returns (B, 1) logits."""
    embproj_p, whh_p, wfc_p, bfc_p = kernel_params
    B, T = x_idx.shape
    GL = whh_p.shape[0]
    B_pad = ((B + BATCH_TILE - 1) // BATCH_TILE) * BATCH_TILE

    # Tiny int32 layout prep only: time-major, batch padded to B_pad (pad rows
    # use index 0, a valid vocab row), as a (T*B_pad, 1) column so the
    # in-kernel one-hot is a plain lane broadcast.
    # NOTE: indices outside [0, VOCAB_PAD) would silently map to a zero
    # embedding row instead of erroring like nn.Embedding.
    idx = jnp.pad(x_idx.astype(jnp.int32).T, ((0, 0), (0, B_pad - B)))
    idx = idx.reshape(T * B_pad, 1)

    out = pl.pallas_call(
        lstm_fused_kernel,
        out_shape=jax.ShapeDtypeStruct((B_pad, GL), jnp.float32),
        in_specs=[pl.BlockSpec(memory_space=pltpu.MemorySpace.VMEM)] * 5,
        out_specs=pl.BlockSpec(memory_space=pltpu.MemorySpace.VMEM),
        scratch_shapes=[pltpu.VMEM((T * B_pad, 4 * GL), jnp.float32)],
    )(idx, embproj_p, whh_p, wfc_p, bfc_p)
    # TODO(synk): if B grows beyond one (8, GL) tile, add a leading batch grid
    # axis marked "parallel" so v7x's second TensorCore takes half the batch;
    # pointless at B=2. If T*B grows large, also tile the time axis so the
    # xproj scratch stays well under the scoped-VMEM limit.
    return out[:B, :OUTPUT_SIZE]


# --------------------------------------------------------------------------
# Init + pure-JAX reference
# --------------------------------------------------------------------------
def init_params(key):
    """Deterministic parameter init matching the PyTorch module's shapes
    (LSTM weights stored pre-transposed to (in, 4H), gate order i,f,g,o)."""
    k_emb, k_ih, k_hh, k_bi, k_bh, k_fw, k_fb = jax.random.split(key, 7)
    bound = 1.0 / np.sqrt(HIDDEN_SIZE)
    emb = jax.random.normal(k_emb, (INPUT_SIZE, EMBEDDING_DIM), jnp.float32)
    w_ih = jax.random.uniform(k_ih, (EMBEDDING_DIM, 4 * HIDDEN_SIZE),
                              jnp.float32, -bound, bound)
    w_hh = jax.random.uniform(k_hh, (HIDDEN_SIZE, 4 * HIDDEN_SIZE),
                              jnp.float32, -bound, bound)
    b_ih = jax.random.uniform(k_bi, (4 * HIDDEN_SIZE,), jnp.float32, -bound, bound)
    b_hh = jax.random.uniform(k_bh, (4 * HIDDEN_SIZE,), jnp.float32, -bound, bound)
    w_fc = jax.random.uniform(k_fw, (HIDDEN_SIZE, OUTPUT_SIZE),
                              jnp.float32, -bound, bound)
    b_fc = jax.random.uniform(k_fb, (OUTPUT_SIZE,), jnp.float32, -bound, bound)
    return {
        "emb": emb,
        "w_ih": w_ih,
        "w_hh": w_hh,
        "b": (b_ih + b_hh).reshape(1, 4 * HIDDEN_SIZE),
        "w_fc": w_fc,
        "b_fc": b_fc.reshape(1, OUTPUT_SIZE),
    }


def reference_forward(x_idx, params):
    """Pure-JAX reference (lax.scan LSTM, PyTorch gate order) for correctness."""
    emb, w_ih, w_hh, b, w_fc, b_fc = (params["emb"], params["w_ih"],
                                      params["w_hh"], params["b"],
                                      params["w_fc"], params["b_fc"])
    B, T = x_idx.shape
    H = w_hh.shape[0]
    x_emb = jnp.take(emb, x_idx, axis=0)           # (B, T, E)

    def step(carry, x_t):
        h, c = carry
        gates = x_t @ w_ih + h @ w_hh + b
        i = jax.nn.sigmoid(gates[:, 0 * H:1 * H])
        f = jax.nn.sigmoid(gates[:, 1 * H:2 * H])
        g = jnp.tanh(gates[:, 2 * H:3 * H])
        o = jax.nn.sigmoid(gates[:, 3 * H:4 * H])
        c = f * c + i * g
        h = o * jnp.tanh(c)
        return (h, c), None

    h0 = jnp.zeros((B, H), jnp.float32)
    (h_fin, _), _ = jax.lax.scan(step, (h0, h0),
                                 jnp.transpose(x_emb, (1, 0, 2)))
    return h_fin @ w_fc + b_fc


if __name__ == "__main__":
    key = jax.random.PRNGKey(0)
    k_params, k_data = jax.random.split(key)
    params = init_params(k_params)
    kparams = prepare_kernel_params(params)      # one-time weight prep/padding

    B, T = 2, 8
    x_idx = jax.random.randint(k_data, (B, T), 0, INPUT_SIZE, dtype=jnp.int32)

    out = lstm_classifier_forward(x_idx, kparams)
    out = jax.block_until_ready(out)

    ref = reference_forward(x_idx, params)
    assert out.shape == (B, OUTPUT_SIZE)
    np.testing.assert_allclose(np.asarray(out), np.asarray(ref),
                               rtol=1e-5, atol=1e-5)
    print("KERNEL_OK")
</pallas_src>

<mosaic_0001>
module attributes {stable_mosaic.version = 11 : i64} {
  func.func @lstm_fused_kernel(%arg0: memref<64x1xi32, #tpu.memory_space<vmem>>, %arg1: memref<16x512xf32, #tpu.memory_space<vmem>>, %arg2: memref<128x512xf32, #tpu.memory_space<vmem>>, %arg3: memref<128x128xf32, #tpu.memory_space<vmem>>, %arg4: memref<1x128xf32, #tpu.memory_space<vmem>>, %arg5: memref<8x128xf32, #tpu.memory_space<vmem>>, %arg6: memref<64x512xf32, #tpu.memory_space<vmem>>) attributes {dimension_semantics = [], scalar_prefetch = 0 : i64, scratch_operands = 1 : i64, tpu.core_type = #tpu.core_type<tc>} {
    %c0 = arith.constant 0 : index
    %c0_0 = arith.constant 0 : index
    %0 = vector.load %arg0[%c0, %c0_0] : memref<64x1xi32, #tpu.memory_space<vmem>>, vector<64x1xi32>
    %1 = tpu.iota {dimensions = array<i32: 1>} : vector<64x16xi32>
    %2 = vector.broadcast %0 : vector<64x1xi32> to vector<64x16xi32>
    %3 = arith.cmpi eq, %2, %1 : vector<64x16xi32>
    %4 = arith.extui %3 : vector<64x16xi1> to vector<64x16xi32>
    %5 = arith.sitofp %4 : vector<64x16xi32> to vector<64x16xf32>
    %c0_1 = arith.constant 0 : index
    %c0_2 = arith.constant 0 : index
    %6 = vector.load %arg1[%c0_1, %c0_2] : memref<16x512xf32, #tpu.memory_space<vmem>>, vector<16x512xf32>
    %cst = arith.constant dense<0.000000e+00> : vector<64x512xf32>
    %7 = tpu.matmul %5, %6, %cst {dimension_numbers = #tpu.dot_dimension_numbers<[1], [0], [0], [1], [0, 0, 1, 1], [], []>} : vector<64x16xf32>, vector<16x512xf32>, vector<64x512xf32> -> vector<64x512xf32>
    %c0_3 = arith.constant 0 : index
    %c0_4 = arith.constant 0 : index
    %8 = vector.load %arg6[%c0_3, %c0_4] : memref<64x512xf32, #tpu.memory_space<vmem>>, vector<64x512xf32>
    tpu.vector_store %arg6[%c0_3, %c0_4], %7 {strides = array<i32>} : memref<64x512xf32, #tpu.memory_space<vmem>>, vector<64x512xf32>,
    %cst_5 = arith.constant 0.000000e+00 : f32
    %9 = vector.broadcast %cst_5 : f32 to vector<8x128xf32>
    %cst_6 = arith.constant 0.000000e+00 : f32
    %10 = vector.broadcast %cst_6 : f32 to vector<8x128xf32>
    %c0_7 = arith.constant 0 : index
    %c0_8 = arith.constant 0 : index
    %11 = vector.load %arg6[%c0_7, %c0_8] : memref<64x512xf32, #tpu.memory_space<vmem>>, vector<8x512xf32>
    %c0_9 = arith.constant 0 : index
    %c0_10 = arith.constant 0 : index
    %12 = vector.load %arg2[%c0_9, %c0_10] : memref<128x512xf32, #tpu.memory_space<vmem>>, vector<128x512xf32>
    %cst_11 = arith.constant dense<0.000000e+00> : vector<8x512xf32>
    %13 = tpu.matmul %9, %12, %cst_11 {dimension_numbers = #tpu.dot_dimension_numbers<[1], [0], [0], [1], [0, 0, 1, 1], [], []>} : vector<8x128xf32>, vector<128x512xf32>, vector<8x512xf32> -> vector<8x512xf32>
    %14 = arith.addf %11, %13 : vector<8x512xf32>
    %15 = vector.extract_strided_slice %14 {offsets = [0, 0], sizes = [8, 384], strides = [1, 1]} : vector<8x512xf32> to vector<8x384xf32>
    %16 = arith.negf %15 : vector<8x384xf32>
    %17 = math.exp %16 : vector<8x384xf32>
    %cst_12 = arith.constant 1.000000e+00 : f32
    %18 = vector.broadcast %cst_12 : f32 to vector<8x384xf32>
    %19 = arith.addf %18, %17 : vector<8x384xf32>
    %20 = arith.divf %18, %19 : vector<8x384xf32>
    %21 = vector.extract_strided_slice %14 {offsets = [0, 384], sizes = [8, 128], strides = [1, 1]} : vector<8x512xf32> to vector<8x128xf32>
    %22 = math.tanh %21 : vector<8x128xf32>
    %23 = vector.extract_strided_slice %20 {offsets = [0, 0], sizes = [8, 128], strides = [1, 1]} : vector<8x384xf32> to vector<8x128xf32>
    %24 = vector.extract_strided_slice %20 {offsets = [0, 128], sizes = [8, 128], strides = [1, 1]} : vector<8x384xf32> to vector<8x128xf32>
    %25 = vector.extract_strided_slice %20 {offsets = [0, 256], sizes = [8, 128], strides = [1, 1]} : vector<8x384xf32> to vector<8x128xf32>
    %26 = arith.mulf %24, %10 : vector<8x128xf32>
    %27 = arith.mulf %23, %22 : vector<8x128xf32>
    %28 = arith.addf %26, %27 : vector<8x128xf32>
    %29 = math.tanh %28 : vector<8x128xf32>
    %30 = arith.mulf %25, %29 : vector<8x128xf32>
    %c8 = arith.constant 8 : index
    %c0_13 = arith.constant 0 : index
    %31 = vector.load %arg6[%c8, %c0_13] : memref<64x512xf32, #tpu.memory_space<vmem>>, vector<8x512xf32>
    %c0_14 = arith.constant 0 : index
    %c0_15 = arith.constant 0 : index
    %32 = vector.load %arg2[%c0_14, %c0_15] : memref<128x512xf32, #tpu.memory_space<vmem>>, vector<128x512xf32>
    %cst_16 = arith.constant dense<0.000000e+00> : vector<8x512xf32>
    %33 = tpu.matmul %30, %32, %cst_16 {dimension_numbers = #tpu.dot_dimension_numbers<[1], [0], [0], [1], [0, 0, 1, 1], [], []>} : vector<8x128xf32>, vector<128x512xf32>, vector<8x512xf32> -> vector<8x512xf32>
    %34 = arith.addf %31, %33 : vector<8x512xf32>
    %35 = vector.extract_strided_slice %34 {offsets = [0, 0], sizes = [8, 384], strides = [1, 1]} : vector<8x512xf32> to vector<8x384xf32>
    %36 = arith.negf %35 : vector<8x384xf32>
    %37 = math.exp %36 : vector<8x384xf32>
    %cst_17 = arith.constant 1.000000e+00 : f32
    %38 = vector.broadcast %cst_17 : f32 to vector<8x384xf32>
    %39 = arith.addf %38, %37 : vector<8x384xf32>
    %40 = arith.divf %38, %39 : vector<8x384xf32>
    %41 = vector.extract_strided_slice %34 {offsets = [0, 384], sizes = [8, 128], strides = [1, 1]} : vector<8x512xf32> to vector<8x128xf32>
    %42 = math.tanh %41 : vector<8x128xf32>
    %43 = vector.extract_strided_slice %40 {offsets = [0, 0], sizes = [8, 128], strides = [1, 1]} : vector<8x384xf32> to vector<8x128xf32>
    %44 = vector.extract_strided_slice %40 {offsets = [0, 128], sizes = [8, 128], strides = [1, 1]} : vector<8x384xf32> to vector<8x128xf32>
    %45 = vector.extract_strided_slice %40 {offsets = [0, 256], sizes = [8, 128], strides = [1, 1]} : vector<8x384xf32> to vector<8x128xf32>
    %46 = arith.mulf %44, %28 : vector<8x128xf32>
    %47 = arith.mulf %43, %42 : vector<8x128xf32>
    %48 = arith.addf %46, %47 : vector<8x128xf32>
    %49 = math.tanh %48 : vector<8x128xf32>
    %50 = arith.mulf %45, %49 : vector<8x128xf32>
    %c16 = arith.constant 16 : index
    %c0_18 = arith.constant 0 : index
    %51 = vector.load %arg6[%c16, %c0_18] : memref<64x512xf32, #tpu.memory_space<vmem>>, vector<8x512xf32>
    %c0_19 = arith.constant 0 : index
    %c0_20 = arith.constant 0 : index
    %52 = vector.load %arg2[%c0_19, %c0_20] : memref<128x512xf32, #tpu.memory_space<vmem>>, vector<128x512xf32>
    %cst_21 = arith.constant dense<0.000000e+00> : vector<8x512xf32>
    %53 = tpu.matmul %50, %52, %cst_21 {dimension_numbers = #tpu.dot_dimension_numbers<[1], [0], [0], [1], [0, 0, 1, 1], [], []>} : vector<8x128xf32>, vector<128x512xf32>, vector<8x512xf32> -> vector<8x512xf32>
    %54 = arith.addf %51, %53 : vector<8x512xf32>
    %55 = vector.extract_strided_slice %54 {offsets = [0, 0], sizes = [8, 384], strides = [1, 1]} : vector<8x512xf32> to vector<8x384xf32>
    %56 = arith.negf %55 : vector<8x384xf32>
    %57 = math.exp %56 : vector<8x384xf32>
    %cst_22 = arith.constant 1.000000e+00 : f32
    %58 = vector.broadcast %cst_22 : f32 to vector<8x384xf32>
    %59 = arith.addf %58, %57 : vector<8x384xf32>
    %60 = arith.divf %58, %59 : vector<8x384xf32>
    %61 = vector.extract_strided_slice %54 {offsets = [0, 384], sizes = [8, 128], strides = [1, 1]} : vector<8x512xf32> to vector<8x128xf32>
    %62 = math.tanh %61 : vector<8x128xf32>
    %63 = vector.extract_strided_slice %60 {offsets = [0, 0], sizes = [8, 128], strides = [1, 1]} : vector<8x384xf32> to vector<8x128xf32>
    %64 = vector.extract_strided_slice %60 {offsets = [0, 128], sizes = [8, 128], strides = [1, 1]} : vector<8x384xf32> to vector<8x128xf32>
    %65 = vector.extract_strided_slice %60 {offsets = [0, 256], sizes = [8, 128], strides = [1, 1]} : vector<8x384xf32> to vector<8x128xf32>
    %66 = arith.mulf %64, %48 : vector<8x128xf32>
    %67 = arith.mulf %63, %62 : vector<8x128xf32>
    %68 = arith.addf %66, %67 : vector<8x128xf32>
    %69 = math.tanh %68 : vector<8x128xf32>
    %70 = arith.mulf %65, %69 : vector<8x128xf32>
    %c24 = arith.constant 24 : index
    %c0_23 = arith.constant 0 : index
    %71 = vector.load %arg6[%c24, %c0_23] : memref<64x512xf32, #tpu.memory_space<vmem>>, vector<8x512xf32>
    %c0_24 = arith.constant 0 : index
    %c0_25 = arith.constant 0 : index
    %72 = vector.load %arg2[%c0_24, %c0_25] : memref<128x512xf32, #tpu.memory_space<vmem>>, vector<128x512xf32>
    %cst_26 = arith.constant dense<0.000000e+00> : vector<8x512xf32>
    %73 = tpu.matmul %70, %72, %cst_26 {dimension_numbers = #tpu.dot_dimension_numbers<[1], [0], [0], [1], [0, 0, 1, 1], [], []>} : vector<8x128xf32>, vector<128x512xf32>, vector<8x512xf32> -> vector<8x512xf32>
    %74 = arith.addf %71, %73 : vector<8x512xf32>
    %75 = vector.extract_strided_slice %74 {offsets = [0, 0], sizes = [8, 384], strides = [1, 1]} : vector<8x512xf32> to vector<8x384xf32>
    %76 = arith.negf %75 : vector<8x384xf32>
    %77 = math.exp %76 : vector<8x384xf32>
    %cst_27 = arith.constant 1.000000e+00 : f32
    %78 = vector.broadcast %cst_27 : f32 to vector<8x384xf32>
    %79 = arith.addf %78, %77 : vector<8x384xf32>
    %80 = arith.divf %78, %79 : vector<8x384xf32>
    %81 = vector.extract_strided_slice %74 {offsets = [0, 384], sizes = [8, 128], strides = [1, 1]} : vector<8x512xf32> to vector<8x128xf32>
    %82 = math.tanh %81 : vector<8x128xf32>
    %83 = vector.extract_strided_slice %80 {offsets = [0, 0], sizes = [8, 128], strides = [1, 1]} : vector<8x384xf32> to vector<8x128xf32>
    %84 = vector.extract_strided_slice %80 {offsets = [0, 128], sizes = [8, 128], strides = [1, 1]} : vector<8x384xf32> to vector<8x128xf32>
    %85 = vector.extract_strided_slice %80 {offsets = [0, 256], sizes = [8, 128], strides = [1, 1]} : vector<8x384xf32> to vector<8x128xf32>
    %86 = arith.mulf %84, %68 : vector<8x128xf32>
    %87 = arith.mulf %83, %82 : vector<8x128xf32>
    %88 = arith.addf %86, %87 : vector<8x128xf32>
    %89 = math.tanh %88 : vector<8x128xf32>
    %90 = arith.mulf %85, %89 : vector<8x128xf32>
    %c32 = arith.constant 32 : index
    %c0_28 = arith.constant 0 : index
    %91 = vector.load %arg6[%c32, %c0_28] : memref<64x512xf32, #tpu.memory_space<vmem>>, vector<8x512xf32>
    %c0_29 = arith.constant 0 : index
    %c0_30 = arith.constant 0 : index
    %92 = vector.load %arg2[%c0_29, %c0_30] : memref<128x512xf32, #tpu.memory_space<vmem>>, vector<128x512xf32>
    %cst_31 = arith.constant dense<0.000000e+00> : vector<8x512xf32>
    %93 = tpu.matmul %90, %92, %cst_31 {dimension_numbers = #tpu.dot_dimension_numbers<[1], [0], [0], [1], [0, 0, 1, 1], [], []>} : vector<8x128xf32>, vector<128x512xf32>, vector<8x512xf32> -> vector<8x512xf32>
    %94 = arith.addf %91, %93 : vector<8x512xf32>
    %95 = vector.extract_strided_slice %94 {offsets = [0, 0], sizes = [8, 384], strides = [1, 1]} : vector<8x512xf32> to vector<8x384xf32>
    %96 = arith.negf %95 : vector<8x384xf32>
    %97 = math.exp %96 : vector<8x384xf32>
    %cst_32 = arith.constant 1.000000e+00 : f32
    %98 = vector.broadcast %cst_32 : f32 to vector<8x384xf32>
    %99 = arith.addf %98, %97 : vector<8x384xf32>
    %100 = arith.divf %98, %99 : vector<8x384xf32>
    %101 = vector.extract_strided_slice %94 {offsets = [0, 384], sizes = [8, 128], strides = [1, 1]} : vector<8x512xf32> to vector<8x128xf32>
    %102 = math.tanh %101 : vector<8x128xf32>
    %103 = vector.extract_strided_slice %100 {offsets = [0, 0], sizes = [8, 128], strides = [1, 1]} : vector<8x384xf32> to vector<8x128xf32>
    %104 = vector.extract_strided_slice %100 {offsets = [0, 128], sizes = [8, 128], strides = [1, 1]} : vector<8x384xf32> to vector<8x128xf32>
    %105 = vector.extract_strided_slice %100 {offsets = [0, 256], sizes = [8, 128], strides = [1, 1]} : vector<8x384xf32> to vector<8x128xf32>
    %106 = arith.mulf %104, %88 : vector<8x128xf32>
    %107 = arith.mulf %103, %102 : vector<8x128xf32>
    %108 = arith.addf %106, %107 : vector<8x128xf32>
    %109 = math.tanh %108 : vector<8x128xf32>
    %110 = arith.mulf %105, %109 : vector<8x128xf32>
    %c40 = arith.constant 40 : index
    %c0_33 = arith.constant 0 : index
    %111 = vector.load %arg6[%c40, %c0_33] : memref<64x512xf32, #tpu.memory_space<vmem>>, vector<8x512xf32>
    %c0_34 = arith.constant 0 : index
    %c0_35 = arith.constant 0 : index
    %112 = vector.load %arg2[%c0_34, %c0_35] : memref<128x512xf32, #tpu.memory_space<vmem>>, vector<128x512xf32>
    %cst_36 = arith.constant dense<0.000000e+00> : vector<8x512xf32>
    %113 = tpu.matmul %110, %112, %cst_36 {dimension_numbers = #tpu.dot_dimension_numbers<[1], [0], [0], [1], [0, 0, 1, 1], [], []>} : vector<8x128xf32>, vector<128x512xf32>, vector<8x512xf32> -> vector<8x512xf32>
    %114 = arith.addf %111, %113 : vector<8x512xf32>
    %115 = vector.extract_strided_slice %114 {offsets = [0, 0], sizes = [8, 384], strides = [1, 1]} : vector<8x512xf32> to vector<8x384xf32>
    %116 = arith.negf %115 : vector<8x384xf32>
    %117 = math.exp %116 : vector<8x384xf32>
    %cst_37 = arith.constant 1.000000e+00 : f32
    %118 = vector.broadcast %cst_37 : f32 to vector<8x384xf32>
    %119 = arith.addf %118, %117 : vector<8x384xf32>
    %120 = arith.divf %118, %119 : vector<8x384xf32>
    %121 = vector.extract_strided_slice %114 {offsets = [0, 384], sizes = [8, 128], strides = [1, 1]} : vector<8x512xf32> to vector<8x128xf32>
    %122 = math.tanh %121 : vector<8x128xf32>
    %123 = vector.extract_strided_slice %120 {offsets = [0, 0], sizes = [8, 128], strides = [1, 1]} : vector<8x384xf32> to vector<8x128xf32>
    %124 = vector.extract_strided_slice %120 {offsets = [0, 128], sizes = [8, 128], strides = [1, 1]} : vector<8x384xf32> to vector<8x128xf32>
    %125 = vector.extract_strided_slice %120 {offsets = [0, 256], sizes = [8, 128], strides = [1, 1]} : vector<8x384xf32> to vector<8x128xf32>
    %126 = arith.mulf %124, %108 : vector<8x128xf32>
    %127 = arith.mulf %123, %122 : vector<8x128xf32>
    %128 = arith.addf %126, %127 : vector<8x128xf32>
    %129 = math.tanh %128 : vector<8x128xf32>
    %130 = arith.mulf %125, %129 : vector<8x128xf32>
    %c48 = arith.constant 48 : index
    %c0_38 = arith.constant 0 : index
    %131 = vector.load %arg6[%c48, %c0_38] : memref<64x512xf32, #tpu.memory_space<vmem>>, vector<8x512xf32>
    %c0_39 = arith.constant 0 : index
    %c0_40 = arith.constant 0 : index
    %132 = vector.load %arg2[%c0_39, %c0_40] : memref<128x512xf32, #tpu.memory_space<vmem>>, vector<128x512xf32>
    %cst_41 = arith.constant dense<0.000000e+00> : vector<8x512xf32>
    %133 = tpu.matmul %130, %132, %cst_41 {dimension_numbers = #tpu.dot_dimension_numbers<[1], [0], [0], [1], [0, 0, 1, 1], [], []>} : vector<8x128xf32>, vector<128x512xf32>, vector<8x512xf32> -> vector<8x512xf32>
    %134 = arith.addf %131, %133 : vector<8x512xf32>
    %135 = vector.extract_strided_slice %134 {offsets = [0, 0], sizes = [8, 384], strides = [1, 1]} : vector<8x512xf32> to vector<8x384xf32>
    %136 = arith.negf %135 : vector<8x384xf32>
    %137 = math.exp %136 : vector<8x384xf32>
    %cst_42 = arith.constant 1.000000e+00 : f32
    %138 = vector.broadcast %cst_42 : f32 to vector<8x384xf32>
    %139 = arith.addf %138, %137 : vector<8x384xf32>
    %140 = arith.divf %138, %139 : vector<8x384xf32>
    %141 = vector.extract_strided_slice %134 {offsets = [0, 384], sizes = [8, 128], strides = [1, 1]} : vector<8x512xf32> to vector<8x128xf32>
    %142 = math.tanh %141 : vector<8x128xf32>
    %143 = vector.extract_strided_slice %140 {offsets = [0, 0], sizes = [8, 128], strides = [1, 1]} : vector<8x384xf32> to vector<8x128xf32>
    %144 = vector.extract_strided_slice %140 {offsets = [0, 128], sizes = [8, 128], strides = [1, 1]} : vector<8x384xf32> to vector<8x128xf32>
    %145 = vector.extract_strided_slice %140 {offsets = [0, 256], sizes = [8, 128], strides = [1, 1]} : vector<8x384xf32> to vector<8x128xf32>
    %146 = arith.mulf %144, %128 : vector<8x128xf32>
    %147 = arith.mulf %143, %142 : vector<8x128xf32>
    %148 = arith.addf %146, %147 : vector<8x128xf32>
    %149 = math.tanh %148 : vector<8x128xf32>
    %150 = arith.mulf %145, %149 : vector<8x128xf32>
    %c56 = arith.constant 56 : index
    %c0_43 = arith.constant 0 : index
    %151 = vector.load %arg6[%c56, %c0_43] : memref<64x512xf32, #tpu.memory_space<vmem>>, vector<8x512xf32>
    %c0_44 = arith.constant 0 : index
    %c0_45 = arith.constant 0 : index
    %152 = vector.load %arg2[%c0_44, %c0_45] : memref<128x512xf32, #tpu.memory_space<vmem>>, vector<128x512xf32>
    %cst_46 = arith.constant dense<0.000000e+00> : vector<8x512xf32>
    %153 = tpu.matmul %150, %152, %cst_46 {dimension_numbers = #tpu.dot_dimension_numbers<[1], [0], [0], [1], [0, 0, 1, 1], [], []>} : vector<8x128xf32>, vector<128x512xf32>, vector<8x512xf32> -> vector<8x512xf32>
    %154 = arith.addf %151, %153 : vector<8x512xf32>
    %155 = vector.extract_strided_slice %154 {offsets = [0, 0], sizes = [8, 384], strides = [1, 1]} : vector<8x512xf32> to vector<8x384xf32>
    %156 = arith.negf %155 : vector<8x384xf32>
    %157 = math.exp %156 : vector<8x384xf32>
    %cst_47 = arith.constant 1.000000e+00 : f32
    %158 = vector.broadcast %cst_47 : f32 to vector<8x384xf32>
    %159 = arith.addf %158, %157 : vector<8x384xf32>
    %160 = arith.divf %158, %159 : vector<8x384xf32>
    %161 = vector.extract_strided_slice %154 {offsets = [0, 384], sizes = [8, 128], strides = [1, 1]} : vector<8x512xf32> to vector<8x128xf32>
    %162 = math.tanh %161 : vector<8x128xf32>
    %163 = vector.extract_strided_slice %160 {offsets = [0, 0], sizes = [8, 128], strides = [1, 1]} : vector<8x384xf32> to vector<8x128xf32>
    %164 = vector.extract_strided_slice %160 {offsets = [0, 128], sizes = [8, 128], strides = [1, 1]} : vector<8x384xf32> to vector<8x128xf32>
    %165 = vector.extract_strided_slice %160 {offsets = [0, 256], sizes = [8, 128], strides = [1, 1]} : vector<8x384xf32> to vector<8x128xf32>
    %166 = arith.mulf %164, %148 : vector<8x128xf32>
    %167 = arith.mulf %163, %162 : vector<8x128xf32>
    %168 = arith.addf %166, %167 : vector<8x128xf32>
    %169 = math.tanh %168 : vector<8x128xf32>
    %170 = arith.mulf %165, %169 : vector<8x128xf32>
    %c0_48 = arith.constant 0 : index
    %c0_49 = arith.constant 0 : index
    %171 = vector.load %arg3[%c0_48, %c0_49] : memref<128x128xf32, #tpu.memory_space<vmem>>, vector<128x128xf32>
    %cst_50 = arith.constant dense<0.000000e+00> : vector<8x128xf32>
    %172 = tpu.matmul %170, %171, %cst_50 {dimension_numbers = #tpu.dot_dimension_numbers<[1], [0], [0], [1], [0, 0, 1, 1], [], []>} : vector<8x128xf32>, vector<128x128xf32>, vector<8x128xf32> -> vector<8x128xf32>
    %c0_51 = arith.constant 0 : index
    %c0_52 = arith.constant 0 : index
    %173 = vector.load %arg4[%c0_51, %c0_52] : memref<1x128xf32, #tpu.memory_space<vmem>>, vector<1x128xf32>
    %174 = vector.broadcast %173 : vector<1x128xf32> to vector<8x128xf32>
    %175 = arith.addf %172, %174 : vector<8x128xf32>
    %c0_53 = arith.constant 0 : index
    %c0_54 = arith.constant 0 : index
    %176 = vector.load %arg5[%c0_53, %c0_54] : memref<8x128xf32, #tpu.memory_space<vmem>>, vector<8x128xf32>
    tpu.vector_store %arg5[%c0_53, %c0_54], %175 {strides = array<i32>} : memref<8x128xf32, #tpu.memory_space<vmem>>, vector<8x128xf32>,
    return
  }
}

</mosaic_0001>

<bundles_post_ra>
// kernel: tpu_custom_call.1
= control target key start
LH: loop header
LB: loop body
LE: loop exit
PB: predicated region body
PF: predicated region fallthrough
CT: control target
= control target key end

     0   :  { %10 = vsyncpa [#allocation4], 0  ;;  %s3087_s0 = inlined_call_operand.vmem [shape: s32[64,1], index: 0, kind: input, shape index: {}]   ;;  %s3088_s1 = inlined_call_operand.vmem [shape: f32[16,512], index: 1, kind: input, shape index: {}]   ;;  %s3089_s2 = inlined_call_operand.hbm [shape: f32[128,512], index: 2, kind: input, shape index: {}]   ;;  %s3090_s3 = inlined_call_operand.hbm [shape: f32[128,128], index: 3, kind: input, shape index: {}]   ;;  %s3091_s4 = inlined_call_operand.vmem [shape: f32[1,128], index: 4, kind: input, shape index: {}]   ;;  %s3092_s5 = inlined_call_operand.hbm [shape: f32[8,128], index: 5, kind: output, shape index: {}]  }
   0x1   :  { %11 = vsyncpa [#allocation7], 0 }
   0x2   :  { %12 = vsyncpa [#allocation5], 0  ;;  %s21_s20 = sshll.u32 %s3089_s2, 4  ;;  %s2024_s21 = smov [#allocation3]   ;;  %s22_s20 = int_to_ptr.hbm [resolvable:$true] %s21_s20 }
   0x3   :  { %s23_s22 = sshll.u32 %s2024_s21, 4  ;;  %s34_s25 = sshll.u32 %s3090_s3, 4  ;;  %s24_s22 = int_to_ptr.vmem [resolvable:$true] %s23_s22  ;;  %s35_s25 = int_to_ptr.hbm [resolvable:$true] %s34_s25 }
   0x4   :  { %s2025_s26 = smov 512   ;;  %s2026_s27 = smov 32  }
   0x5   :  { %29 = dma.hbm_to_vmem [thread:$0]  %s22_s20, 8192, %s24_s22, [#allocation4], %s2025_s26, %s2025_s26, %s2026_s27  }
   0x6   :  { %s2027_s28 = smov [#allocation6]   ;;  %s2028_s30 = smov 128  }
   0x7   :  { %s36_s29 = sshll.u32 %s2027_s28, 4  ;;  %s2029_s6 = smov 8   ;;  %s37_s29 = int_to_ptr.vmem [resolvable:$true] %s36_s29 }
   0x8   :  { %42 = dma.hbm_to_vmem [thread:$0]  %s35_s25, 2048, %s37_s29, [#allocation7], %s2028_s30, %s2028_s30, %s2029_s6  }
   0x9   :  { %2018 = dma.done.wait [#allocation4], 8192  }
   0xa   :  { %2019 = vsyncadd [#allocation4], 4294959104 }
   0xb   :  { %2020 = dma.done.wait [#allocation7], 2048  }
   0xc   :  { %2021 = vsyncadd [#allocation7], 4294965248  ;;  %v2030_v0 = vmov 0   ;;  %v58_v1 = vld [vmem:[%s3087_s0 + $0x28] sm:$0xff]  ;;  %v53_v2 = vld [vmem:[%s3087_s0] sm:$0xff]  ;;  %v61_v25 = vlaneseq  ;;  %vm119_vm0 = vcmask 130048  }
   0xd   :  { %1751 = vset.pattern.permute.xlu1 %v2030_v0  ;;  %1750 = vset.pattern.permute.xlu0 %v2030_v0  ;;  %v54_v3 = vld [vmem:[%s3087_s0 + $0x8] sm:$0xff]  ;;  %v115_v4 = vld [vmem:[%s3088_s1 + $0x20] sm:$0xff]  ;;  %v59_v5 = vld [vmem:[%s3087_s0 + $0x30] sm:$0xff]  ;;  %v3101_v35 = vmov 0.0   ;;  %s2032_s10 = smov [#allocation8]   ;;  %s1660_s14 = sshll.u32 %s3092_s5, 4  ;;  %s1661_s14 = int_to_ptr.hbm [resolvable:$true] %s1660_s14 }
   0xe   :  { %1752 = vset.pattern.permute.xlu2 %v2030_v0  ;;  %79 = vperm.xlu0 %1750, %v58_v1   ;;  %v60_v6 = vld [vmem:[%s3087_s0 + $0x38] sm:$0xff]  ;;  %v55_v7 = vld [vmem:[%s3087_s0 + $0x10] sm:$0xff]  ;;  %v57_v9 = vld [vmem:[%s3087_s0 + $0x20] sm:$0xff]  ;;  %v2143_v27 = vand.u32 127, %v61_v25  ;;  %s1658_s11 = sshll.u32 %s2032_s10, 4  ;;  %s1659_s11 = int_to_ptr.vmem [resolvable:$true] %s1658_s11 }
   0xf   :  { %64 = vperm.xlu1 %1751, %v53_v2   ;;  %67 = vperm.xlu2 %1752, %v54_v3   ;;  %v56_v8 = vld [vmem:[%s3087_s0 + $0x18] sm:$0xff]  ;;  %v111_v10 = vld [vmem:[%s3088_s1] sm:$0xff]  ;;  %v116_v11 = vld [vmem:[%s3088_s1 + $0x28] sm:$0xff] }
  0x10   :  { %158 = vmatpush.msra.mxu0 %v115_v4  ;;  %1735 = vmatpush.msra.mxu1 %v115_v4  ;;  %v112_v12 = vld [vmem:[%s3088_s1 + $0x8] sm:$0xff]  ;;  %v117_v13 = vld [vmem:[%s3088_s1 + $0x30] sm:$0xff]  ;;  %v2108_v14 = vld [vmem:[#allocation3 + $0x1e0] sm:$0xff] }
  0x11   :  { %1736 = vmatpush.msra.mxu2 %v115_v4  ;;  %1737 = vmatpush.msra.mxu3 %v115_v4  ;;  %v2110_v15 = vld [vmem:[#allocation3 + $0x1c0] sm:$0xff]  ;;  %v113_v16 = vld [vmem:[%s3088_s1 + $0x10] sm:$0xff]  ;;  %v118_v17 = vld [vmem:[%s3088_s1 + $0x38] sm:$0xff] }
  0x12   :  { %159 = vmatpush.msra.mxu0 %v111_v10  ;;  %1738 = vmatpush.msra.mxu1 %v111_v10  ;;  %v2119_v18 = vld [vmem:[#allocation3 + $0x1a0] sm:$0xff]  ;;  %v114_v19 = vld [vmem:[%s3088_s1 + $0x18] sm:$0xff]  ;;  %v2153_v33 = vld [vmem:[#allocation3 + $0x1e8] sm:$0xff] }
  0x13   :  { %1739 = vmatpush.msra.mxu2 %v111_v10  ;;  %1740 = vmatpush.msra.mxu3 %v111_v10  ;;  %v2126_v20 = vld [vmem:[#allocation3 + $0x180] sm:$0xff]  ;;  %v2165_v38 = vld [vmem:[#allocation3 + $0x1c8] sm:$0xff]  ;;  %v2195_v50 = vld [vmem:[#allocation3 + $0x1f0] sm:$0xff] }
  0x14   :  { %199 = vmatpush.msrb.mxu1 %v116_v11  ;;  %408 = vmatpush.msrb.mxu0 %v2108_v14  ;;  %v2129_v21 = vld [vmem:[#allocation3 + $0x160] sm:$0xff]  ;;  %v2172_v40 = vld [vmem:[#allocation3 + $0x1a8] sm:$0xff]  ;;  %v2198_v51 = vld [vmem:[#allocation3 + $0x1f8] sm:$0xff] }
  0x15   :  { %240 = vmatpush.msrb.mxu2 %v117_v13  ;;  %281 = vmatpush.msrb.mxu3 %v118_v17  ;;  %v2131_v22 = vld [vmem:[#allocation3 + $0x140] sm:$0xff]  ;;  %v2178_v42 = vld [vmem:[#allocation3 + $0x188] sm:$0xff]  ;;  %v2212_v54 = vld [vmem:[#allocation3 + $0x1d0] sm:$0xff] }
  0x16   :  { %82 = vperm.xlu0 %1750, %v59_v5   ;;  %200 = vmatpush.msrb.mxu1 %v112_v12  ;;  %v2134_v23 = vld [vmem:[#allocation3 + $0x120] sm:$0xff]  ;;  %v2205_v52 = vld [vmem:[#allocation3 + $0x168] sm:$0xff]  ;;  %v2214_v55 = vld [vmem:[#allocation3 + $0x1d8] sm:$0xff] }
  0x17   :  { %85 = vperm.xlu1 %1751, %v60_v6   ;;  %70 = vperm.xlu2 %1752, %v55_v7   ;;  %v2137_v24 = vld [vmem:[#allocation3 + $0x100] sm:$0xff]  ;;  %v2219_v56 = vld [vmem:[#allocation3 + $0x148] sm:$0xff]  ;;  %v2221_v57 = vld [vmem:[#allocation3 + $0x1b0] sm:$0xff] }
  0x18   :  { %409 = vmatpush.msrb.mxu0 %v2110_v15  ;;  %241 = vmatpush.msrb.mxu2 %v113_v16  ;;  %v2141_v26 = vld [vmem:[#allocation3 + $0xe0] sm:$0xff]  ;;  %v2224_v58 = vld [vmem:[#allocation3 + $0x1b8] sm:$0xff]  ;;  %v2229_v59 = vld [vmem:[#allocation3 + $0x128] sm:$0xff] }
  0x19   :  { %282 = vmatpush.msrb.mxu3 %v114_v19  ;;  %3195 = vst [vmem:[#allocation12_spill] sm:$0xff] %v2141_v26  ;;  %v2146_v28 = vld [vmem:[#allocation3 + $0xc0] sm:$0xff]  ;;  %v2238_v61 = vld [vmem:[#allocation3 + $0x190] sm:$0xff]  ;;  %v2241_v62 = vld [vmem:[#allocation3 + $0x198] sm:$0xff] }
  0x1a   :  { %410 = vmatpush.msrb.mxu0 %v2119_v18  ;;  %3196 = vst [vmem:[#allocation13_spill] sm:$0xff] %v2146_v28  ;;  %v2148_v29 = vld [vmem:[#allocation3 + $0xa0] sm:$0xff]  ;;  %v2247_v63 = vld [vmem:[#allocation3 + $0x108] sm:$0xff]  ;;  %v2252_v1 = vld [vmem:[#allocation3 + $0x170] sm:$0xff] }
  0x1b   :  { %3197 = vst [vmem:[#allocation14_spill] sm:$0xff] %v2148_v29  ;;  %v2156_v34 = vld [vmem:[#allocation3 + $0x80] sm:$0xff]  ;;  %v2254_v2 = vld [vmem:[#allocation3 + $0x178] sm:$0xff]  ;;  %v2258_v3 = vld [vmem:[#allocation3 + $0xe8] sm:$0xff] }
  0x1c   :  { %411 = vmatpush.msrb.mxu0 %v2126_v20  ;;  %3198 = vst [vmem:[#allocation15_spill] sm:$0xff] %v2156_v34  ;;  %v2169_v39 = vld [vmem:[#allocation3 + $0x60] sm:$0xff]  ;;  %v2260_v4 = vld [vmem:[#allocation3 + $0x150] sm:$0xff]  ;;  %v2263_v5 = vld [vmem:[#allocation3 + $0x158] sm:$0xff] }
  0x1d   :  { %3199 = vst [vmem:[#allocation16_spill] sm:$0xff] %v2169_v39  ;;  %v2174_v41 = vld [vmem:[#allocation3 + $0x40] sm:$0xff]  ;;  %v2269_v6 = vld [vmem:[#allocation3 + $0xc8] sm:$0xff]  ;;  %v2291_v12 = vld [vmem:[#allocation3 + $0x110] sm:$0xff] }
  0x1e   :  { %73 = vperm.xlu0 %1750, %v56_v8   ;;  %412 = vmatpush.msrb.mxu0 %v2129_v21  ;;  %3200 = vst [vmem:[#allocation17_spill] sm:$0xff] %v2174_v41  ;;  %v2180_v43 = vld [vmem:[#allocation3 + $0x20] sm:$0xff]  ;;  %v2276_v8 = vld [vmem:[#allocation3 + $0x130] sm:$0xff]  ;;  %v2285_v10 = vld [vmem:[#allocation3 + $0xa8] sm:$0xff] }
  0x1f   :  { %76 = vperm.xlu1 %1751, %v57_v9   ;;  %3201 = vst [vmem:[#allocation18_spill] sm:$0xff] %v2180_v43  ;;  %v2207_v53 = vld [vmem:[#allocation3] sm:$0xff]  ;;  %v2279_v9 = vld [vmem:[#allocation3 + $0x138] sm:$0xff]  ;;  %v2297_v16 = vld [vmem:[#allocation3 + $0x88] sm:$0xff] }
  0x20   :  { %413 = vmatpush.msrb.mxu0 %v2131_v22  ;;  %3202 = vst [vmem:[#allocation19_spill] sm:$0xff] %v2207_v53  ;;  %v2293_v13 = vld [vmem:[#allocation3 + $0x118] sm:$0xff]  ;;  %v2299_v17 = vld [vmem:[#allocation3 + $0xf0] sm:$0xff]  ;;  %v2308_v25 = vld [vmem:[#allocation3 + $0x68] sm:$0xff] }
  0x21   :  { %3203 = vst [vmem:[#allocation20_spill] sm:$0xff] %v2285_v10  ;;  %v2302_v19 = vld [vmem:[#allocation3 + $0xf8] sm:$0xff] }
  0x22   :  { %414 = vmatpush.msrb.mxu0 %v2134_v23  ;;  %3204 = vst [vmem:[#allocation21_spill] sm:$0xff] %v2297_v16 }
  0x23   :  { %3205 = vst [vmem:[#allocation22_spill] sm:$0xff] %v2308_v25 }
  0x24   :  { %415 = vmatpush.msrb.mxu0 %v2137_v24 }
  0x26   :  { %416 = vmatpush.msrb.mxu0 %v2141_v26 }
  0x28   :  { %417 = vmatpush.msrb.mxu0 %v2146_v28 }
  0x2a   :  { %418 = vmatpush.msrb.mxu0 %v2148_v29 }
  0x2c   :  { %419 = vmatpush.msrb.mxu0 %v2156_v34 }
  0x2e   :  { %420 = vmatpush.msrb.mxu0 %v2169_v39 }
  0x30   :  { %421 = vmatpush.msrb.mxu0 %v2174_v41 }
  0x32   :  { %422 = vmatpush.msrb.mxu0 %v2180_v43 }
  0x34   :  { %423 = vmatpush.msrb.mxu0 %v2207_v53 }
  0x69   :  { %v68_v30 = vpop.permute.xlu2 %67 }
  0x6a   :  { %vm88_vm3 = vcmp.eq.s32.totalorder %v68_v30, %v2143_v27 }
  0x6b   :  { %v2183_v45 = vsel %vm88_vm3, 1.0, %v3101_v35 }
  0x71   :  { %v71_v49 = vpop.permute.xlu2 %70 }
  0x72   :  { %vm89_vm6 = vcmp.eq.s32.totalorder %v71_v49, %v2143_v27  ;;  %v2340_v49 = vld [vmem:[#allocation3 + $0x98] sm:$0xff] }
  0x73   :  { %v2232_v60 = vsel %vm89_vm6, 1.0, %v3101_v35  ;;  %3211 = vst [vmem:[#allocation28_spill] sm:$0xff] %v2340_v49 }
  0x80   :  { %v80_v31 = vpop.permute.xlu0 %79 }
  0x81   :  { %v65_v32 = vpop.permute.xlu1 %64  ;;  %vm92_vm1 = vcmp.eq.s32.totalorder %v80_v31, %v2143_v27  ;;  %v2315_v31 = vld [vmem:[#allocation3 + $0xd0] sm:$0xff] }
  0x82   :  { %vm87_vm2 = vcmp.eq.s32.totalorder %v65_v32, %v2143_v27  ;;  %v2159_v36 = vsel %vm92_vm1, 1.0, %v3101_v35  ;;  %v2324_v32 = vld [vmem:[#allocation3 + $0x48] sm:$0xff] }
  0x83   :  { %v1671_v37 = vsel %vm87_vm2, 1.0, %v3101_v35  ;;  %1684 = vmatmul.msk.f32.vlgmr.msra.gmra.mxu1 %vm119_vm0, %v2159_v36  ;;  %3206 = vst [vmem:[#allocation23_spill] sm:$0xff] %v2324_v32 }
  0x84   :  { %1679 = vmatmul.msk.f32.vlgmr.msra.gmra.mxu0 %vm119_vm0, %v1671_v37  ;;  %428 = vmatpush.msra.mxu1 %v2153_v33 }
  0x85   :  { %559 = vmatpush.msra.mxu0 %v2108_v14 }
  0x86   :  { %429 = vmatpush.msra.mxu1 %v2165_v38 }
  0x87   :  { %560 = vmatpush.msra.mxu0 %v2110_v15 }
  0x88   :  { %v83_v44 = vpop.permute.xlu0 %82  ;;  %430 = vmatpush.msra.mxu1 %v2172_v40 }
  0x89   :  { %v86_v46 = vpop.permute.xlu1 %85  ;;  %vm93_vm4 = vcmp.eq.s32.totalorder %v83_v44, %v2143_v27  ;;  %561 = vmatpush.msra.mxu0 %v2119_v18  ;;  %v2331_v44 = vld [vmem:[#allocation3 + $0xb8] sm:$0xff] }
  0x8a   :  { %vm94_vm5 = vcmp.eq.s32.totalorder %v86_v46, %v2143_v27  ;;  %v2190_v47 = vsel %vm93_vm4, 1.0, %v3101_v35  ;;  %431 = vmatpush.msra.mxu1 %v2178_v42  ;;  %3208 = vst [vmem:[#allocation25_spill] sm:$0xff] %v2331_v44  ;;  %v2337_v46 = vld [vmem:[#allocation3 + $0x90] sm:$0xff] }
  0x8b   :  { %v2193_v48 = vsel %vm94_vm5, 1.0, %v3101_v35  ;;  %1685 = vmatmul.msk.f32.vlgmr.msra.gmra.mxu2 %vm119_vm0, %v2190_v47  ;;  %1687 = vmatmul.msk.f32.vlgmr.msrb.gmra.mxu1 %vm119_vm0, %v1671_v37  ;;  %3210 = vst [vmem:[#allocation27_spill] sm:$0xff] %v2337_v46 }
  0x8c   :  { %1680 = vmatmul.msk.f32.gmra.mxu0 %vm119_vm0, %v2183_v45  ;;  %1686 = vmatmul.msk.f32.vlgmr.msra.gmra.mxu3 %vm119_vm0, %v2193_v48 }
  0x8d   :  { %448 = vmatpush.msra.mxu2 %v2195_v50  ;;  %468 = vmatpush.msra.mxu3 %v2198_v51 }
  0x8e   :  { %432 = vmatpush.msra.mxu1 %v2205_v52  ;;  %562 = vmatpush.msra.mxu0 %v2126_v20 }
  0x8f   :  { %449 = vmatpush.msra.mxu2 %v2212_v54  ;;  %469 = vmatpush.msra.mxu3 %v2214_v55 }
  0x90   :  { %433 = vmatpush.msra.mxu1 %v2219_v56  ;;  %v74_v0 = vpop.permute.xlu0 %73  ;;  %563 = vmatpush.msra.mxu0 %v2129_v21 }
  0x91   :  { %450 = vmatpush.msra.mxu2 %v2221_v57  ;;  %470 = vmatpush.msra.mxu3 %v2224_v58  ;;  %vm90_vm7 = vcmp.eq.s32.totalorder %v74_v0, %v2143_v27  ;;  %v77_v11 = vpop.permute.xlu1 %76  ;;  %v2351_v0 = vld [vmem:[#allocation3 + $0x70] sm:$0xff] }
  0x92   :  { %434 = vmatpush.msra.mxu1 %v2229_v59  ;;  %v1674_v7 = vsel %vm90_vm7, 1.0, %v3101_v35  ;;  %564 = vmatpush.msra.mxu0 %v2131_v22  ;;  %vm91_vm8 = vcmp.eq.s32.totalorder %v77_v11, %v2143_v27  ;;  %v2318_v27 = vld [vmem:[#allocation3 + $0xd8] sm:$0xff]  ;;  %3213 = vst [vmem:[#allocation30_spill] sm:$0xff] %v2351_v0  ;;  %v2359_v11 = vld [vmem:[#allocation3 + $0x50] sm:$0xff] }
  0x93   :  { %1695 = vmatmul.msk.f32.vlgmr.msrb.gmra.mxu2 %vm119_vm0, %v1671_v37  ;;  %1688 = vmatmul.msk.f32.gmra.mxu1 %vm119_vm0, %v2183_v45  ;;  %v1675_v30 = vsel %vm91_vm8, 1.0, %v3101_v35  ;;  %3214 = vst [vmem:[#allocation31_spill] sm:$0xff] %v2359_v11 }
  0x94   :  { %1681 = vmatmul.msk.f32.gmra.mxu0 %vm119_vm0, %v2232_v60  ;;  %1703 = vmatmul.msk.f32.vlgmr.msrb.gmra.mxu3 %vm119_vm0, %v1671_v37  ;;  %v2329_v37 = vld [vmem:[#allocation3 + $0xb0] sm:$0xff] }
  0x95   :  { %451 = vmatpush.msra.mxu2 %v2238_v61  ;;  %471 = vmatpush.msra.mxu3 %v2241_v62  ;;  %3207 = vst [vmem:[#allocation24_spill] sm:$0xff] %v2329_v37 }
  0x96   :  { %435 = vmatpush.msra.mxu1 %v2247_v63  ;;  %565 = vmatpush.msra.mxu0 %v2134_v23 }
  0x97   :  { %452 = vmatpush.msra.mxu2 %v2252_v1  ;;  %472 = vmatpush.msra.mxu3 %v2254_v2 }
  0x98   :  { %436 = vmatpush.msra.mxu1 %v2258_v3  ;;  %566 = vmatpush.msra.mxu0 %v2137_v24 }
  0x99   :  { %453 = vmatpush.msra.mxu2 %v2260_v4  ;;  %473 = vmatpush.msra.mxu3 %v2263_v5 }
  0x9a   :  { %437 = vmatpush.msra.mxu1 %v2269_v6  ;;  %567 = vmatpush.msra.mxu0 %v2141_v26  ;;  %v2363_v26 = vld [vmem:[#allocation3 + $0x58] sm:$0xff] }
  0x9b   :  { %1696 = vmatmul.msk.f32.gmra.mxu2 %vm119_vm0, %v2183_v45  ;;  %1689 = vmatmul.msk.f32.gmra.mxu1 %vm119_vm0, %v2232_v60  ;;  %3216 = vst [vmem:[#allocation33_spill] sm:$0xff] %v2363_v26 }
  0x9c   :  { %1682 = vmatmul.msk.f32.gmra.mxu0 %vm119_vm0, %v1674_v7  ;;  %1704 = vmatmul.msk.f32.gmra.mxu3 %vm119_vm0, %v2183_v45  ;;  %v2335_v45 = vld [vmem:[#allocation3 + $0x28] sm:$0xff] }
  0x9d   :  { %454 = vmatpush.msra.mxu2 %v2276_v8  ;;  %474 = vmatpush.msra.mxu3 %v2279_v9  ;;  %3209 = vst [vmem:[#allocation26_spill] sm:$0xff] %v2335_v45 }
  0x9e   :  { %438 = vmatpush.msra.mxu1 %v2285_v10  ;;  %568 = vmatpush.msra.mxu0 %v2146_v28  ;;  %v2361_v28 = vld [vmem:[#allocation3 + $0x78] sm:$0xff] }
  0x9f   :  { %455 = vmatpush.msra.mxu2 %v2291_v12  ;;  %475 = vmatpush.msra.mxu3 %v2293_v13  ;;  %3215 = vst [vmem:[#allocation32_spill] sm:$0xff] %v2361_v28 }
  0xa0   :  { %439 = vmatpush.msra.mxu1 %v2297_v16  ;;  %569 = vmatpush.msra.mxu0 %v2148_v29  ;;  %v2369_v29 = vld [vmem:[#allocation3 + $0x38] sm:$0xff] }
  0xa1   :  { %456 = vmatpush.msra.mxu2 %v2299_v17  ;;  %476 = vmatpush.msra.mxu3 %v2302_v19  ;;  %3218 = vst [vmem:[#allocation35_spill] sm:$0xff] %v2369_v29 }
  0xa2   :  { %440 = vmatpush.msra.mxu1 %v2308_v25  ;;  %570 = vmatpush.msra.mxu0 %v2156_v34 }
  0xa3   :  { %1697 = vmatmul.msk.f32.gmra.mxu2 %vm119_vm0, %v2232_v60  ;;  %1690 = vmatmul.msk.f32.gmra.mxu1 %vm119_vm0, %v1674_v7 }
  0xa4   :  { %1683 = vmatmul.msk.f32.gmra.mxu0 %vm119_vm0, %v1675_v30  ;;  %1705 = vmatmul.msk.f32.gmra.mxu3 %vm119_vm0, %v2232_v60  ;;  %v2345_v60 = vld [vmem:[#allocation3 + $0x8] sm:$0xff] }
  0xa5   :  { %457 = vmatpush.msra.mxu2 %v2315_v31  ;;  %477 = vmatpush.msra.mxu3 %v2318_v27  ;;  %3212 = vst [vmem:[#allocation29_spill] sm:$0xff] %v2345_v60 }
  0xa6   :  { %441 = vmatpush.msra.mxu1 %v2324_v32  ;;  %571 = vmatpush.msra.mxu0 %v2169_v39 }
  0xa7   :  { %458 = vmatpush.msra.mxu2 %v2329_v37  ;;  %478 = vmatpush.msra.mxu3 %v2331_v44 }
  0xa8   :  { %442 = vmatpush.msra.mxu1 %v2335_v45  ;;  %572 = vmatpush.msra.mxu0 %v2174_v41 }
  0xa9   :  { %459 = vmatpush.msra.mxu2 %v2337_v46  ;;  %479 = vmatpush.msra.mxu3 %v2340_v49 }
  0xaa   :  { %443 = vmatpush.msra.mxu1 %v2345_v60  ;;  %v2367_v60 = vld [vmem:[#allocation3 + $0x30] sm:$0xff]  ;;  %573 = vmatpush.msra.mxu0 %v2180_v43 }
  0xab   :  { %1698 = vmatmul.msk.f32.gmra.mxu2 %vm119_vm0, %v1674_v7  ;;  %1691 = vmatmul.msk.f32.gmra.mxu1 %vm119_vm0, %v1675_v30  ;;  %3217 = vst [vmem:[#allocation34_spill] sm:$0xff] %v2367_v60 }
  0xac   :  { %424 = vmatmul.f32.vlgmr.msrb.gmra.mxu0 %v3101_v35  ;;  %1706 = vmatmul.msk.f32.gmra.mxu3 %vm119_vm0, %v1674_v7  ;;  %v2375_v7 = vld [vmem:[#allocation3 + $0x18] sm:$0xff]  ;;  %v2381_v35 = vld [vmem:[#allocation3 + $0x10] sm:$0xff] }
  0xad   :  { %460 = vmatpush.msra.mxu2 %v2351_v0  ;;  %480 = vmatpush.msra.mxu3 %v2361_v28  ;;  %3219 = vst [vmem:[#allocation36_spill] sm:$0xff] %v2375_v7 }
  0xae   :  { %579 = vmatpush.msrb.mxu1 %v2153_v33  ;;  %3220 = vst [vmem:[#allocation37_spill] sm:$0xff] %v2381_v35  ;;  %574 = vmatpush.msra.mxu0 %v2207_v53 }
  0xaf   :  { %461 = vmatpush.msra.mxu2 %v2359_v11  ;;  %481 = vmatpush.msra.mxu3 %v2363_v26 }
  0xb0   :  { %580 = vmatpush.msrb.mxu1 %v2165_v38  ;;  %710 = vmatpush.msrb.mxu0 %v2108_v14 }
  0xb1   :  { %462 = vmatpush.msra.mxu2 %v2367_v60  ;;  %482 = vmatpush.msra.mxu3 %v2369_v29 }
  0xb2   :  { %581 = vmatpush.msrb.mxu1 %v2172_v40  ;;  %711 = vmatpush.msrb.mxu0 %v2110_v15 }
  0xb3   :  { %1699 = vmatmul.msk.f32.gmra.mxu2 %vm119_vm0, %v1675_v30  ;;  %483 = vmatpush.msra.mxu3 %v2375_v7 }
  0xb4   :  { %1692 = vmatmul.msk.f32.gmra.mxu1 %vm119_vm0, %v2159_v36  ;;  %1707 = vmatmul.msk.f32.gmra.mxu3 %vm119_vm0, %v1675_v30  ;;  %v3224_v30 = vld [vmem:[#allocation13_spill] sm:$0xff] }
  0xb5   :  { %463 = vmatpush.msra.mxu2 %v2381_v35  ;;  %619 = vmatpush.msrb.mxu3 %v2198_v51 }
  0xb6   :  { %582 = vmatpush.msrb.mxu1 %v2178_v42  ;;  %712 = vmatpush.msrb.mxu0 %v2119_v18 }
  0xb7   :  { %599 = vmatpush.msrb.mxu2 %v2195_v50  ;;  %620 = vmatpush.msrb.mxu3 %v2214_v55 }
  0xb8   :  { %583 = vmatpush.msrb.mxu1 %v2205_v52  ;;  %713 = vmatpush.msrb.mxu0 %v2126_v20 }
  0xb9   :  { %600 = vmatpush.msrb.mxu2 %v2212_v54  ;;  %621 = vmatpush.msrb.mxu3 %v2224_v58 }
  0xba   :  { %584 = vmatpush.msrb.mxu1 %v2219_v56  ;;  %714 = vmatpush.msrb.mxu0 %v2129_v21 }
  0xbb   :  { %601 = vmatpush.msrb.mxu2 %v2221_v57  ;;  %622 = vmatpush.msrb.mxu3 %v2241_v62 }
  0xbc   :  { %1700 = vmatmul.msk.f32.gmra.mxu2 %vm119_vm0, %v2159_v36  ;;  %1693 = vmatmul.msk.f32.gmra.mxu1 %vm119_vm0, %v2190_v47 }
  0xbd   :  { %1708 = vmatmul.msk.f32.gmra.mxu3 %vm119_vm0, %v2159_v36  ;;  %602 = vmatpush.msrb.mxu2 %v2238_v61  ;;  %v3221_v36 = vmov 0.0  }
  0xbe   :  { %623 = vmatpush.msrb.mxu3 %v2254_v2  ;;  %585 = vmatpush.msrb.mxu1 %v2229_v59 }
  0xbf   :  { %603 = vmatpush.msrb.mxu2 %v2252_v1  ;;  %715 = vmatpush.msrb.mxu0 %v2131_v22 }
  0xc0   :  { %624 = vmatpush.msrb.mxu3 %v2263_v5  ;;  %586 = vmatpush.msrb.mxu1 %v2247_v63 }
  0xc1   :  { %604 = vmatpush.msrb.mxu2 %v2260_v4  ;;  %716 = vmatpush.msrb.mxu0 %v2134_v23 }
  0xc2   :  { %625 = vmatpush.msrb.mxu3 %v2279_v9  ;;  %587 = vmatpush.msrb.mxu1 %v2258_v3 }
  0xc3   :  { %605 = vmatpush.msrb.mxu2 %v2276_v8  ;;  %717 = vmatpush.msrb.mxu0 %v2137_v24 }
  0xc4   :  { %1701 = vmatmul.msk.f32.gmra.mxu2 %vm119_vm0, %v2190_v47  ;;  %626 = vmatpush.msrb.mxu3 %v2293_v13 }
  0xc5   :  { %1694 = vmatmul.msk.f32.gmra.mxu1 %vm119_vm0, %v2193_v48  ;;  %1709 = vmatmul.msk.f32.gmra.mxu3 %vm119_vm0, %v2190_v47  ;;  %v3222_v47 = vld [vmem:[#allocation12_spill] sm:$0xff] }
  0xc6   :  { %627 = vmatpush.msrb.mxu3 %v2302_v19  ;;  %588 = vmatpush.msrb.mxu1 %v2269_v6 }
  0xc7   :  { %606 = vmatpush.msrb.mxu2 %v2291_v12  ;;  %718 = vmatpush.msrb.mxu0 %v3222_v47 }
  0xc8   :  { %628 = vmatpush.msrb.mxu3 %v2318_v27  ;;  %589 = vmatpush.msrb.mxu1 %v2285_v10 }
  0xc9   :  { %607 = vmatpush.msrb.mxu2 %v2299_v17  ;;  %719 = vmatpush.msrb.mxu0 %v3224_v30 }
  0xca   :  { %629 = vmatpush.msrb.mxu3 %v2331_v44  ;;  %590 = vmatpush.msrb.mxu1 %v2297_v16 }
  0xcb   :  { %608 = vmatpush.msrb.mxu2 %v2315_v31 }
  0xcc   :  { %1702 = vmatmul.msk.f32.gmra.mxu2 %vm119_vm0, %v2193_v48  ;;  %630 = vmatpush.msrb.mxu3 %v2340_v49 }
  0xcd   :  { %1710 = vmatmul.msk.f32.gmra.mxu3 %vm119_vm0, %v2193_v48  ;;  %444 = vmatmul.f32.vlgmr.msra.gmra.mxu1 %v3221_v36  ;;  %v3223_v48 = vld [vmem:[#allocation29_spill] sm:$0xff] }
  0xce   :  { %591 = vmatpush.msrb.mxu1 %v2308_v25  ;;  %631 = vmatpush.msrb.mxu3 %v2361_v28 }
  0xcf   :  { %609 = vmatpush.msrb.mxu2 %v2329_v37 }
  0xd0   :  { %592 = vmatpush.msrb.mxu1 %v2324_v32  ;;  %632 = vmatpush.msrb.mxu3 %v2363_v26 }
  0xd1   :  { %610 = vmatpush.msrb.mxu2 %v2337_v46 }
  0xd2   :  { %593 = vmatpush.msrb.mxu1 %v2335_v45  ;;  %633 = vmatpush.msrb.mxu3 %v2369_v29 }
  0xd3   :  { %611 = vmatpush.msrb.mxu2 %v2351_v0 }
  0xd4   :  { %464 = vmatmul.f32.vlgmr.msra.gmra.mxu2 %v3221_v36  ;;  %594 = vmatpush.msrb.mxu1 %v3223_v48 }
  0xd5   :  { %484 = vmatmul.f32.vlgmr.msra.gmra.mxu3 %v3221_v36  ;;  %612 = vmatpush.msrb.mxu2 %v2359_v11  ;;  %v3225_v36 = vld [vmem:[#allocation14_spill] sm:$0xff] }
  0xd6   :  { %634 = vmatpush.msrb.mxu3 %v2375_v7  ;;  %730 = vmatpush.msra.mxu1 %v2153_v33 }
  0xd7   :  { %613 = vmatpush.msrb.mxu2 %v2367_v60  ;;  %720 = vmatpush.msrb.mxu0 %v3225_v36 }
  0xd8   :  { %770 = vmatpush.msra.mxu3 %v2198_v51  ;;  %731 = vmatpush.msra.mxu1 %v2165_v38 }
  0xd9   :  { %614 = vmatpush.msrb.mxu2 %v2381_v35  ;;  %721 = vmatpush.msrb.mxu0 %v2156_v34 }
  0xda   :  { %771 = vmatpush.msra.mxu3 %v2214_v55  ;;  %732 = vmatpush.msra.mxu1 %v2172_v40 }
  0xdb   :  { %750 = vmatpush.msra.mxu2 %v2195_v50  ;;  %722 = vmatpush.msrb.mxu0 %v2169_v39 }
  0xdc   :  { %772 = vmatpush.msra.mxu3 %v2224_v58  ;;  %733 = vmatpush.msra.mxu1 %v2178_v42 }
  0xdd   :  { %751 = vmatpush.msra.mxu2 %v2212_v54  ;;  %723 = vmatpush.msrb.mxu0 %v2174_v41 }
  0xde   :  { %773 = vmatpush.msra.mxu3 %v2241_v62  ;;  %734 = vmatpush.msra.mxu1 %v2205_v52 }
  0xdf   :  { %752 = vmatpush.msra.mxu2 %v2221_v57  ;;  %724 = vmatpush.msrb.mxu0 %v2180_v43 }
  0xe0   :  { %774 = vmatpush.msra.mxu3 %v2254_v2  ;;  %735 = vmatpush.msra.mxu1 %v2219_v56 }
  0xe1   :  { %753 = vmatpush.msra.mxu2 %v2238_v61  ;;  %725 = vmatpush.msrb.mxu0 %v2207_v53 }
  0xe2   :  { %775 = vmatpush.msra.mxu3 %v2263_v5  ;;  %736 = vmatpush.msra.mxu1 %v2229_v59 }
  0xe3   :  { %754 = vmatpush.msra.mxu2 %v2252_v1 }
  0xe4   :  { %776 = vmatpush.msra.mxu3 %v2279_v9  ;;  %737 = vmatpush.msra.mxu1 %v2247_v63 }
  0xe5   :  { %755 = vmatpush.msra.mxu2 %v2260_v4 }
  0xe6   :  { %777 = vmatpush.msra.mxu3 %v2293_v13  ;;  %738 = vmatpush.msra.mxu1 %v2258_v3 }
  0xe7   :  { %756 = vmatpush.msra.mxu2 %v2276_v8 }
  0xe8   :  { %778 = vmatpush.msra.mxu3 %v2302_v19  ;;  %739 = vmatpush.msra.mxu1 %v2269_v6 }
  0xe9   :  { %757 = vmatpush.msra.mxu2 %v2291_v12 }
  0xea   :  { %779 = vmatpush.msra.mxu3 %v2318_v27  ;;  %740 = vmatpush.msra.mxu1 %v2285_v10 }
  0xeb   :  { %758 = vmatpush.msra.mxu2 %v2299_v17 }
  0xec   :  { %780 = vmatpush.msra.mxu3 %v2331_v44  ;;  %741 = vmatpush.msra.mxu1 %v2297_v16 }
  0xed   :  { %759 = vmatpush.msra.mxu2 %v2315_v31 }
  0xee   :  { %781 = vmatpush.msra.mxu3 %v2340_v49  ;;  %742 = vmatpush.msra.mxu1 %v2308_v25 }
  0xef   :  { %760 = vmatpush.msra.mxu2 %v2329_v37 }
  0xf0   :  { %782 = vmatpush.msra.mxu3 %v2361_v28  ;;  %743 = vmatpush.msra.mxu1 %v2324_v32 }
  0xf1   :  { %761 = vmatpush.msra.mxu2 %v2337_v46 }
  0xf2   :  { %783 = vmatpush.msra.mxu3 %v2363_v26  ;;  %744 = vmatpush.msra.mxu1 %v2335_v45 }
  0xf3   :  { %762 = vmatpush.msra.mxu2 %v2351_v0 }
  0xf4   :  { %784 = vmatpush.msra.mxu3 %v2369_v29  ;;  %745 = vmatpush.msra.mxu1 %v3223_v48 }
  0xf5   :  { %763 = vmatpush.msra.mxu2 %v2359_v11 }
  0xf6   :  { %785 = vmatpush.msra.mxu3 %v2375_v7 }
  0xf7   :  { %764 = vmatpush.msra.mxu2 %v2367_v60 }
  0xf9   :  { %765 = vmatpush.msra.mxu2 %v2381_v35 }
 0x100   :  { %v2521_v53 = vpop.f32.mrf.mxu1 }
 0x101   :  { %3226 = vst [vmem:[#allocation12_spill] sm:$0xff] %v2521_v53  ;;  %v161_v43 = vpop.f32.mrf.mxu0 }
 0x108   :  { %v202_v26 = vpop.f32.mrf.mxu1 }
 0x109   :  { %v2523_v32 = vpop.f32.mrf.mxu0 }
 0x10a   :  { %3227 = vst [vmem:[#allocation13_spill] sm:$0xff] %v2523_v32 }
 0x10e   :  { %v2525_v45 = vpop.f32.mrf.mxu2 }
 0x10f   :  { %3228 = vst [vmem:[#allocation38_spill] sm:$0xff] %v2525_v45  ;;  %v2527_v29 = vpop.f32.mrf.mxu3 }
 0x110   :  { %3229 = vst [vmem:[#allocation39_spill] sm:$0xff] %v2527_v29  ;;  %v2529_v41 = vpop.f32.mrf.mxu1 }
 0x111   :  { %3230 = vst [vmem:[#allocation40_spill] sm:$0xff] %v2529_v41  ;;  %v2531_v48 = vpop.f32.mrf.mxu0 }
 0x112   :  { %3231 = vst [vmem:[#allocation41_spill] sm:$0xff] %v2531_v48 }
 0x116   :  { %v243_v7 = vpop.f32.mrf.mxu2 }
 0x117   :  { %v284_v11 = vpop.f32.mrf.mxu3 }
 0x118   :  { %v2533_v28 = vpop.f32.mrf.mxu1 }
 0x119   :  { %3232 = vst [vmem:[#allocation42_spill] sm:$0xff] %v2533_v28  ;;  %v2537_v35 = vpop.f32.mrf.mxu0 }
 0x11a   :  { %3234 = vst [vmem:[#allocation44_spill] sm:$0xff] %v2537_v35 }
 0x11e   :  { %v2535_v60 = vpop.f32.mrf.mxu2 }
 0x11f   :  { %3233 = vst [vmem:[#allocation43_spill] sm:$0xff] %v2535_v60  ;;  %v2539_v53 = vpop.f32.mrf.mxu3 }
 0x120   :  { %3235 = vst [vmem:[#allocation45_spill] sm:$0xff] %v2539_v53  ;;  %v2541_v0 = vpop.f32.mrf.mxu1 }
 0x121   :  { %3236 = vst [vmem:[#allocation46_spill] sm:$0xff] %v2541_v0  ;;  %v2547_v29 = vpop.f32.mrf.mxu0 }
 0x122   :  { %3239 = vst [vmem:[#allocation49_spill] sm:$0xff] %v2547_v29 }
 0x126   :  { %v2543_v32 = vpop.f32.mrf.mxu2 }
 0x127   :  { %3237 = vst [vmem:[#allocation47_spill] sm:$0xff] %v2543_v32  ;;  %v2545_v45 = vpop.f32.mrf.mxu3 }
 0x128   :  { %3238 = vst [vmem:[#allocation48_spill] sm:$0xff] %v2545_v45  ;;  %v2549_v41 = vpop.f32.mrf.mxu1 }
 0x129   :  { %3240 = vst [vmem:[#allocation50_spill] sm:$0xff] %v2549_v41  ;;  %v425_v60 = vpop.f32.mrf.mxu0 }
 0x12a   :  { %v488_v35 = vadd.f32 %v425_v60, %v161_v43 }
 0x12c   :  { %v1711_v32 = vmul.f32 -1.442695, %v488_v35 }
 0x12e   :  { %v2551_v48 = vpop.f32.mrf.mxu2  ;;  %1754 = vpow2.f32 %v1711_v32 }
 0x12f   :  { %3241 = vst [vmem:[#allocation51_spill] sm:$0xff] %v2551_v48  ;;  %v2553_v25 = vpop.f32.mrf.mxu3 }
 0x130   :  { %3242 = vst [vmem:[#allocation52_spill] sm:$0xff] %v2553_v25 }
 0x131   :  { %v2555_v28 = vpop.f32.mrf.mxu1 }
 0x132   :  { %3243 = vst [vmem:[#allocation53_spill] sm:$0xff] %v2555_v28 }
 0x134   :  { %v1755_v48 = vpop.eup %1754 }
 0x135   :  { %v501_v28 = vadd.f32 1.0, %v1755_v48 }
 0x136   :  { %v2557_v39 = vpop.f32.mrf.mxu2 }
 0x137   :  { %3244 = vst [vmem:[#allocation54_spill] sm:$0xff] %v2557_v39  ;;  %v2559_v53 = vpop.f32.mrf.mxu3  ;;  %1756 = vrcp.f32 %v501_v28  ;;  %vm509_vm10 = vweird.f32 %v501_v28  ;;  %v513_v44 = vand.u32 2147483647, %v501_v28 }
 0x138   :  { %3245 = vst [vmem:[#allocation55_spill] sm:$0xff] %v2559_v53 }
 0x139   :  { %v2561_v0 = vpop.f32.mrf.mxu1  ;;  %vm514_vm15 = vcmp.eq.f32.partialorder %v513_v44, 8.507059e+37 }
 0x13a   :  { %3246 = vst [vmem:[#allocation56_spill] sm:$0xff] %v2561_v0 }
 0x13d   :  { %v1757_v32 = vpop.eup %1756 }
 0x13e   :  { %vm510_vm9 = vweird.f32 %v1757_v32 }
 0x13f   :  { %v2563_v45 = vpop.f32.mrf.mxu2  ;;  %vm511_vm12 = vmor %vm509_vm10, %vm510_vm9 }
 0x140   :  { %3247 = vst [vmem:[#allocation57_spill] sm:$0xff] %v2563_v45  ;;  %v2565_v29 = vpop.f32.mrf.mxu3 }
 0x141   :  { %3248 = vst [vmem:[#allocation58_spill] sm:$0xff] %v2565_v29  ;;  %v505_v29 = vmul.f32 %v1757_v32, %v501_v28 }
 0x142   :  { %v2567_v41 = vpop.f32.mrf.mxu1 }
 0x143   :  { %3249 = vst [vmem:[#allocation59_spill] sm:$0xff] %v2567_v41 }
 0x147   :  { %v2569_v25 = vpop.f32.mrf.mxu2 }
 0x148   :  { %3250 = vst [vmem:[#allocation60_spill] sm:$0xff] %v2569_v25  ;;  %v2571_v49 = vpop.f32.mrf.mxu3  ;;  %v506_v25 = vsub.f32 1.0, %v505_v29 }
 0x149   :  { %3251 = vst [vmem:[#allocation61_spill] sm:$0xff] %v2571_v49 }
 0x14a   :  { %v445_v43 = vpop.f32.mrf.mxu1 }
 0x14b   :  { %v489_v60 = vadd.f32 %v445_v43, %v202_v26  ;;  %v507_v26 = vmul.f32 %v1757_v32, %v506_v25 }
 0x14d   :  { %v1712_v53 = vmul.f32 -1.442695, %v489_v60 }
 0x14f   :  { %1758 = vpow2.f32 %v1712_v53  ;;  %v2573_v0 = vpop.f32.mrf.mxu2 }
 0x150   :  { %3252 = vst [vmem:[#allocation62_spill] sm:$0xff] %v2573_v0  ;;  %v2575_v35 = vpop.f32.mrf.mxu3  ;;  %v508_v0 = vadd.f32 %v1757_v32, %v507_v26 }
 0x151   :  { %3253 = vst [vmem:[#allocation63_spill] sm:$0xff] %v2575_v35 }
 0x155   :  { %v1759_v45 = vpop.eup %1758 }
 0x156   :  { %v502_v39 = vadd.f32 1.0, %v1759_v45  ;;  %v515_v45 = vand.u32 2147483648, %v501_v28 }
 0x157   :  { %v465_v41 = vpop.f32.mrf.mxu2 }
 0x158   :  { %1760 = vrcp.f32 %v502_v39  ;;  %v490_v46 = vadd.f32 %v465_v41, %v243_v7  ;;  %v485_v48 = vpop.f32.mrf.mxu3  ;;  %v530_v34 = vand.u32 2147483648, %v502_v39  ;;  %v528_v29 = vand.u32 2147483647, %v502_v39 }
 0x159   :  { %v491_v49 = vadd.f32 %v485_v48, %v284_v11  ;;  %vm524_vm13 = vweird.f32 %v502_v39  ;;  %v512_v41 = vsel %vm511_vm12, %v1757_v32, %v508_v0 }
 0x15a   :  { %v1713_v16 = vmul.f32 -1.442695, %v490_v46  ;;  %v531_v46 = vor.u32 1.1754944e-38, %v530_v34  ;;  %vm529_vm0 = vcmp.eq.f32.partialorder %v528_v29, 8.507059e+37 }
 0x15c   :  { %1762 = vpow2.f32 %v1713_v16 }
 0x15d   :  { %1764 = vtanh.f32 %v491_v49  ;;  %v516_v49 = vor.u32 1.1754944e-38, %v515_v45 }
 0x15e   :  { %v1761_v43 = vpop.eup %1760 }
 0x15f   :  { %v520_v60 = vmul.f32 %v1761_v43, %v502_v39  ;;  %vm525_vm11 = vweird.f32 %v1761_v43  ;;  %v517_v7 = vsel %vm514_vm15, %v516_v49, %v512_v41  ;;  %v3275_v41 = vld [vmem:[#allocation29_spill] sm:$0xff] }
 0x160   :  { %vm526_vm14 = vmor %vm524_vm13, %vm525_vm11 }
 0x161   :  { %v521_v53 = vsub.f32 1.0, %v520_v60 }
 0x162   :  { %v1763_v35 = vpop.eup %1762 }
 0x163   :  { %v522_v37 = vmul.f32 %v1761_v43, %v521_v53  ;;  %v503_v10 = vadd.f32 1.0, %v1763_v35  ;;  %v1765_v25 = vpop.eup %1764 }
 0x164   :  { %v551_v28 = vmul.f32 %v1765_v25, %v517_v7  ;;  %v3277_v25 = vld [vmem:[#allocation36_spill] sm:$0xff] }
 0x165   :  { %1766 = vrcp.f32 %v503_v10  ;;  %v523_v16 = vadd.f32 %v1761_v43, %v522_v37  ;;  %v545_v39 = vand.u32 2147483648, %v503_v10  ;;  %v543_v34 = vand.u32 2147483647, %v503_v10 }
 0x166   :  { %vm539_vm2 = vweird.f32 %v503_v10 }
 0x167   :  { %v527_v11 = vsel %vm526_vm14, %v1761_v43, %v523_v16  ;;  %v546_v44 = vor.u32 1.1754944e-38, %v545_v39  ;;  %vm544_vm4 = vcmp.eq.f32.partialorder %v543_v34, 8.507059e+37  ;;  %v3276_v16 = vld [vmem:[#allocation37_spill] sm:$0xff]  ;;  %v3280_v39 = vld [vmem:[#allocation43_spill] sm:$0xff] }
 0x168   :  { %v532_v48 = vsel %vm529_vm0, %v531_v46, %v527_v11  ;;  %v3278_v11 = vld [vmem:[#allocation13_spill] sm:$0xff] }
 0x169   :  { %v550_v26 = vmul.f32 0.0, %v532_v48  ;;  %v3279_v48 = vld [vmem:[#allocation40_spill] sm:$0xff] }
 0x16b   :  { %v1767_v60 = vpop.eup %1766  ;;  %v2577_v35 = vadd.f32 %v551_v28, %v550_v26 }
 0x16c   :  { %v535_v53 = vmul.f32 %v1767_v60, %v503_v10  ;;  %vm540_vm1 = vweird.f32 %v1767_v60  ;;  %v3271_v10 = vld [vmem:[#allocation26_spill] sm:$0xff] }
 0x16d   :  { %1768 = vtanh.f32 %v2577_v35  ;;  %vm541_vm3 = vmor %vm539_vm2, %vm540_vm1 }
 0x16e   :  { %v536_v36 = vsub.f32 1.0, %v535_v53 }
 0x170   :  { %v537_v37 = vmul.f32 %v1767_v60, %v536_v36  ;;  %v3274_v36 = vld [vmem:[#allocation19_spill] sm:$0xff] }
 0x172   :  { %v538_v0 = vadd.f32 %v1767_v60, %v537_v37 }
 0x173   :  { %v1769_v43 = vpop.eup %1768 }
 0x174   :  { %v542_v32 = vsel %vm541_vm3, %v1767_v60, %v538_v0 }
 0x175   :  { %v547_v45 = vsel %vm544_vm4, %v546_v44, %v542_v32 }
 0x176   :  { %v554_v29 = vmul.f32 %v1769_v43, %v547_v45 }
 0x178   :  { %575 = vmatmul.f32.vlgmr.msra.gmra.mxu0 %v554_v29  ;;  %595 = vmatmul.f32.vlgmr.msrb.gmra.mxu1 %v554_v29 }
 0x179   :  { %615 = vmatmul.f32.vlgmr.msrb.gmra.mxu2 %v554_v29  ;;  %635 = vmatmul.f32.vlgmr.msrb.gmra.mxu3 %v554_v29 }
 0x17a   :  { %861 = vmatpush.msra.mxu0 %v2108_v14  ;;  %881 = vmatpush.msrb.mxu1 %v2153_v33  ;;  %v3254_v14 = vld [vmem:[#allocation14_spill] sm:$0xff]  ;;  %v3262_v33 = vld [vmem:[#allocation16_spill] sm:$0xff] }
 0x17b   :  { %901 = vmatpush.msrb.mxu2 %v2195_v50  ;;  %921 = vmatpush.msrb.mxu3 %v2198_v51  ;;  %v3266_v50 = vld [vmem:[#allocation17_spill] sm:$0xff]  ;;  %v3267_v51 = vld [vmem:[#allocation23_spill] sm:$0xff] }
 0x17c   :  { %862 = vmatpush.msra.mxu0 %v2110_v15  ;;  %882 = vmatpush.msrb.mxu1 %v2165_v38  ;;  %v3255_v15 = vld [vmem:[#allocation20_spill] sm:$0xff]  ;;  %v3263_v38 = vld [vmem:[#allocation22_spill] sm:$0xff] }
 0x17d   :  { %902 = vmatpush.msrb.mxu2 %v2212_v54  ;;  %922 = vmatpush.msrb.mxu3 %v2214_v55 }
 0x17e   :  { %863 = vmatpush.msra.mxu0 %v2119_v18  ;;  %883 = vmatpush.msrb.mxu1 %v2172_v40  ;;  %v3256_v18 = vld [vmem:[#allocation24_spill] sm:$0xff]  ;;  %v3264_v40 = vld [vmem:[#allocation30_spill] sm:$0xff] }
 0x17f   :  { %903 = vmatpush.msrb.mxu2 %v2221_v57  ;;  %923 = vmatpush.msrb.mxu3 %v2224_v58 }
 0x180   :  { %864 = vmatpush.msra.mxu0 %v2126_v20  ;;  %884 = vmatpush.msrb.mxu1 %v2178_v42  ;;  %v3257_v20 = vld [vmem:[#allocation25_spill] sm:$0xff]  ;;  %v3265_v42 = vld [vmem:[#allocation32_spill] sm:$0xff] }
 0x181   :  { %904 = vmatpush.msrb.mxu2 %v2238_v61  ;;  %924 = vmatpush.msrb.mxu3 %v2241_v62 }
 0x182   :  { %865 = vmatpush.msra.mxu0 %v2129_v21  ;;  %885 = vmatpush.msrb.mxu1 %v2205_v52  ;;  %v3258_v21 = vld [vmem:[#allocation15_spill] sm:$0xff] }
 0x183   :  { %905 = vmatpush.msrb.mxu2 %v2252_v1  ;;  %925 = vmatpush.msrb.mxu3 %v2254_v2  ;;  %v3268_v52 = vld [vmem:[#allocation31_spill] sm:$0xff] }
 0x184   :  { %866 = vmatpush.msra.mxu0 %v2131_v22  ;;  %886 = vmatpush.msrb.mxu1 %v2219_v56  ;;  %v3259_v22 = vld [vmem:[#allocation21_spill] sm:$0xff] }
 0x185   :  { %906 = vmatpush.msrb.mxu2 %v2260_v4  ;;  %926 = vmatpush.msrb.mxu3 %v2263_v5  ;;  %v3269_v56 = vld [vmem:[#allocation33_spill] sm:$0xff] }
 0x186   :  { %867 = vmatpush.msra.mxu0 %v2134_v23  ;;  %887 = vmatpush.msrb.mxu1 %v2229_v59  ;;  %v3260_v23 = vld [vmem:[#allocation27_spill] sm:$0xff]  ;;  %v3270_v59 = vld [vmem:[#allocation18_spill] sm:$0xff] }
 0x187   :  { %907 = vmatpush.msrb.mxu2 %v2276_v8  ;;  %927 = vmatpush.msrb.mxu3 %v2279_v9 }
 0x188   :  { %868 = vmatpush.msra.mxu0 %v2137_v24  ;;  %888 = vmatpush.msrb.mxu1 %v2247_v63  ;;  %v3261_v24 = vld [vmem:[#allocation28_spill] sm:$0xff] }
 0x189   :  { %908 = vmatpush.msrb.mxu2 %v2291_v12  ;;  %928 = vmatpush.msrb.mxu3 %v2293_v13 }
 0x18a   :  { %869 = vmatpush.msra.mxu0 %v3222_v47  ;;  %889 = vmatpush.msrb.mxu1 %v2258_v3  ;;  %v3272_v47 = vld [vmem:[#allocation34_spill] sm:$0xff] }
 0x18b   :  { %909 = vmatpush.msrb.mxu2 %v2299_v17  ;;  %929 = vmatpush.msrb.mxu3 %v2302_v19 }
 0x18c   :  { %870 = vmatpush.msra.mxu0 %v3224_v30  ;;  %890 = vmatpush.msrb.mxu1 %v2269_v6  ;;  %v3273_v30 = vld [vmem:[#allocation35_spill] sm:$0xff] }
 0x18d   :  { %910 = vmatpush.msrb.mxu2 %v2315_v31  ;;  %930 = vmatpush.msrb.mxu3 %v2318_v27 }
 0x18e   :  { %871 = vmatpush.msra.mxu0 %v3254_v14  ;;  %891 = vmatpush.msrb.mxu1 %v3255_v15 }
 0x18f   :  { %911 = vmatpush.msrb.mxu2 %v3256_v18  ;;  %931 = vmatpush.msrb.mxu3 %v3257_v20 }
 0x190   :  { %872 = vmatpush.msra.mxu0 %v3258_v21  ;;  %892 = vmatpush.msrb.mxu1 %v3259_v22 }
 0x191   :  { %912 = vmatpush.msrb.mxu2 %v3260_v23  ;;  %932 = vmatpush.msrb.mxu3 %v3261_v24 }
 0x192   :  { %873 = vmatpush.msra.mxu0 %v3262_v33  ;;  %893 = vmatpush.msrb.mxu1 %v3263_v38  ;;  %v3281_v33 = vld [vmem:[#allocation45_spill] sm:$0xff] }
 0x193   :  { %913 = vmatpush.msrb.mxu2 %v3264_v40  ;;  %933 = vmatpush.msrb.mxu3 %v3265_v42 }
 0x194   :  { %874 = vmatpush.msra.mxu0 %v3266_v50  ;;  %894 = vmatpush.msrb.mxu1 %v3267_v51 }
 0x195   :  { %914 = vmatpush.msrb.mxu2 %v3268_v52  ;;  %934 = vmatpush.msrb.mxu3 %v3269_v56 }
 0x196   :  { %875 = vmatpush.msra.mxu0 %v3270_v59  ;;  %895 = vmatpush.msrb.mxu1 %v3271_v10 }
 0x197   :  { %915 = vmatpush.msrb.mxu2 %v3272_v47  ;;  %935 = vmatpush.msrb.mxu3 %v3273_v30 }
 0x198   :  { %876 = vmatpush.msra.mxu0 %v3274_v36  ;;  %896 = vmatpush.msrb.mxu1 %v3275_v41 }
 0x199   :  { %916 = vmatpush.msrb.mxu2 %v3276_v16  ;;  %936 = vmatpush.msrb.mxu3 %v3277_v25 }
 0x1f5   :  { %v576_v46 = vpop.f32.mrf.mxu0  ;;  %v596_v49 = vpop.f32.mrf.mxu1 }
 0x1f6   :  { %v639_v7 = vadd.f32 %v576_v46, %v3278_v11  ;;  %v640_v26 = vadd.f32 %v596_v49, %v3279_v48 }
 0x1f8   :  { %v1714_v28 = vmul.f32 -1.442695, %v639_v7  ;;  %v1715_v60 = vmul.f32 -1.442695, %v640_v26 }
 0x1fa   :  { %1770 = vpow2.f32 %v1714_v28 }
 0x1fb   :  { %1772 = vpow2.f32 %v1715_v60 }
 0x1fc   :  { %v616_v53 = vpop.f32.mrf.mxu2  ;;  %v636_v45 = vpop.f32.mrf.mxu3 }
 0x1fd   :  { %v641_v37 = vadd.f32 %v616_v53, %v3280_v39  ;;  %v642_v50 = vadd.f32 %v636_v45, %v3281_v33 }
 0x1ff   :  { %v1716_v34 = vmul.f32 -1.442695, %v641_v37 }
 0x200   :  { %v1771_v0 = vpop.eup %1770 }
 0x201   :  { %v1773_v44 = vpop.eup %1772  ;;  %v652_v32 = vadd.f32 1.0, %v1771_v0  ;;  %1774 = vpow2.f32 %v1716_v34 }
 0x202   :  { %v653_v43 = vadd.f32 1.0, %v1773_v44 }
 0x203   :  { %1776 = vrcp.f32 %v652_v32  ;;  %v666_v7 = vand.u32 2147483648, %v652_v32  ;;  %v664_v28 = vand.u32 2147483647, %v652_v32  ;;  %vm660_vm7 = vweird.f32 %v652_v32 }
 0x204   :  { %1778 = vrcp.f32 %v653_v43  ;;  %v681_v48 = vand.u32 2147483648, %v653_v43  ;;  %v679_v53 = vand.u32 2147483647, %v653_v43  ;;  %vm675_vm8 = vweird.f32 %v653_v43 }
 0x205   :  { %v667_v0 = vor.u32 1.1754944e-38, %v666_v7  ;;  %vm665_vm11 = vcmp.eq.f32.partialorder %v664_v28, 8.507059e+37 }
 0x206   :  { %v682_v45 = vor.u32 1.1754944e-38, %v681_v48  ;;  %vm680_vm12 = vcmp.eq.f32.partialorder %v679_v53, 8.507059e+37 }
 0x207   :  { %v1775_v29 = vpop.eup %1774 }
 0x208   :  { %v654_v14 = vadd.f32 1.0, %v1775_v29 }
 0x209   :  { %v1777_v21 = vpop.eup %1776 }
 0x20a   :  { %v1779_v59 = vpop.eup %1778  ;;  %v656_v36 = vmul.f32 %v1777_v21, %v652_v32  ;;  %1780 = vrcp.f32 %v654_v14  ;;  %vm661_vm5 = vweird.f32 %v1777_v21  ;;  %v696_v7 = vand.u32 2147483648, %v654_v14 }
 0x20b   :  { %v671_v46 = vmul.f32 %v1779_v59, %v653_v43  ;;  %1782 = vtanh.f32 %v642_v50  ;;  %vm676_vm6 = vweird.f32 %v1779_v59  ;;  %vm662_vm9 = vmor %vm660_vm7, %vm661_vm5  ;;  %vm690_vm14 = vweird.f32 %v654_v14 }
 0x20c   :  { %v657_v49 = vsub.f32 1.0, %v656_v36  ;;  %vm677_vm10 = vmor %vm675_vm8, %vm676_vm6  ;;  %v697_v28 = vor.u32 1.1754944e-38, %v696_v7 }
 0x20d   :  { %v672_v11 = vsub.f32 1.0, %v671_v46 }
 0x20e   :  { %v658_v26 = vmul.f32 %v1777_v21, %v657_v49 }
 0x20f   :  { %v673_v60 = vmul.f32 %v1779_v59, %v672_v11 }
 0x210   :  { %v1781_v39 = vpop.eup %1780  ;;  %v659_v37 = vadd.f32 %v1777_v21, %v658_v26 }
 0x211   :  { %v686_v34 = vmul.f32 %v1781_v39, %v654_v14  ;;  %v674_v44 = vadd.f32 %v1779_v59, %v673_v60  ;;  %v1783_v33 = vpop.eup %1782  ;;  %vm691_vm13 = vweird.f32 %v1781_v39 }
 0x212   :  { %v663_v29 = vsel %vm662_vm9, %v1777_v21, %v659_v37  ;;  %v694_v21 = vand.u32 2147483647, %v654_v14  ;;  %vm692_vm15 = vmor %vm690_vm14, %vm691_vm13  ;;  %v2658_v14 = vld [vmem:[#allocation3 + $0x1f0] sm:$0xff]  ;;  %v2664_v37 = vld [vmem:[#allocation3 + $0x1c0] sm:$0xff] }
 0x213   :  { %v687_v50 = vsub.f32 1.0, %v686_v34  ;;  %v668_v36 = vsel %vm665_vm11, %v667_v0, %v663_v29  ;;  %v678_v46 = vsel %vm677_vm10, %v1779_v59, %v674_v44  ;;  %v2667_v34 = vld [vmem:[#allocation3 + $0x1c8] sm:$0xff]  ;;  %v2672_v0 = vld [vmem:[#allocation3 + $0x1a0] sm:$0xff] }
 0x214   :  { %v683_v49 = vsel %vm680_vm12, %v682_v45, %v678_v46  ;;  %v702_v11 = vmul.f32 %v1783_v33, %v668_v36  ;;  %vm695_vm0 = vcmp.eq.f32.partialorder %v694_v21, 8.507059e+37  ;;  %v2675_v44 = vld [vmem:[#allocation3 + $0x1a8] sm:$0xff]  ;;  %v2680_v45 = vld [vmem:[#allocation3 + $0x180] sm:$0xff] }
 0x215   :  { %v701_v25 = vmul.f32 %v683_v49, %v2577_v35  ;;  %v688_v26 = vmul.f32 %v1781_v39, %v687_v50  ;;  %v2652_v35 = vld [vmem:[#allocation3 + $0x1e0] sm:$0xff]  ;;  %v2683_v29 = vld [vmem:[#allocation3 + $0x188] sm:$0xff] }
 0x217   :  { %v2649_v32 = vadd.f32 %v702_v11, %v701_v25  ;;  %v689_v43 = vadd.f32 %v1781_v39, %v688_v26  ;;  %v2655_v25 = vld [vmem:[#allocation3 + $0x1e8] sm:$0xff] }
 0x219   :  { %1784 = vtanh.f32 %v2649_v32  ;;  %v693_v48 = vsel %vm692_vm15, %v1781_v39, %v689_v43  ;;  %v2661_v39 = vld [vmem:[#allocation3 + $0x1f8] sm:$0xff] }
 0x21a   :  { %v698_v60 = vsel %vm695_vm0, %v697_v28, %v693_v48 }
 0x21f   :  { %v1785_v59 = vpop.eup %1784 }
 0x220   :  { %v705_v53 = vmul.f32 %v1785_v59, %v698_v60 }
 0x222   :  { %726 = vmatmul.f32.vlgmr.msrb.gmra.mxu0 %v705_v53  ;;  %746 = vmatmul.f32.vlgmr.msra.gmra.mxu1 %v705_v53 }
 0x223   :  { %766 = vmatmul.f32.vlgmr.msra.gmra.mxu2 %v705_v53  ;;  %786 = vmatmul.f32.vlgmr.msra.gmra.mxu3 %v705_v53 }
 0x224   :  { %1012 = vmatpush.msrb.mxu0 %v2652_v35  ;;  %1032 = vmatpush.msra.mxu1 %v2655_v25 }
 0x225   :  { %1052 = vmatpush.msra.mxu2 %v2658_v14  ;;  %1072 = vmatpush.msra.mxu3 %v2661_v39 }
 0x226   :  { %1013 = vmatpush.msrb.mxu0 %v2664_v37  ;;  %1033 = vmatpush.msra.mxu1 %v2667_v34 }
 0x227   :  { %1053 = vmatpush.msra.mxu2 %v2212_v54  ;;  %1073 = vmatpush.msra.mxu3 %v2214_v55  ;;  %v2688_v54 = vld [vmem:[#allocation3 + $0x160] sm:$0xff]  ;;  %v2691_v55 = vld [vmem:[#allocation3 + $0x168] sm:$0xff] }
 0x228   :  { %1014 = vmatpush.msrb.mxu0 %v2672_v0  ;;  %1034 = vmatpush.msra.mxu1 %v2675_v44 }
 0x229   :  { %1054 = vmatpush.msra.mxu2 %v2221_v57  ;;  %1074 = vmatpush.msra.mxu3 %v2224_v58  ;;  %v2696_v57 = vld [vmem:[#allocation3 + $0x140] sm:$0xff]  ;;  %v2699_v58 = vld [vmem:[#allocation3 + $0x148] sm:$0xff] }
 0x22a   :  { %1015 = vmatpush.msrb.mxu0 %v2680_v45  ;;  %1035 = vmatpush.msra.mxu1 %v2683_v29 }
 0x22b   :  { %1055 = vmatpush.msra.mxu2 %v2238_v61  ;;  %1075 = vmatpush.msra.mxu3 %v2241_v62  ;;  %v2704_v61 = vld [vmem:[#allocation3 + $0x120] sm:$0xff]  ;;  %v2707_v62 = vld [vmem:[#allocation3 + $0x128] sm:$0xff] }
 0x22c   :  { %1016 = vmatpush.msrb.mxu0 %v2688_v54  ;;  %1036 = vmatpush.msra.mxu1 %v2691_v55 }
 0x22d   :  { %1056 = vmatpush.msra.mxu2 %v2252_v1  ;;  %1076 = vmatpush.msra.mxu3 %v2254_v2  ;;  %v2712_v1 = vld [vmem:[#allocation3 + $0x100] sm:$0xff] }
 0x22e   :  { %1017 = vmatpush.msrb.mxu0 %v2696_v57  ;;  %1037 = vmatpush.msra.mxu1 %v2699_v58  ;;  %v2718_v2 = vld [vmem:[#allocation3 + $0xe0] sm:$0xff] }
 0x22f   :  { %1057 = vmatpush.msra.mxu2 %v2260_v4  ;;  %1077 = vmatpush.msra.mxu3 %v2263_v5  ;;  %v2724_v4 = vld [vmem:[#allocation3 + $0xc0] sm:$0xff] }
 0x230   :  { %1018 = vmatpush.msrb.mxu0 %v2704_v61  ;;  %1038 = vmatpush.msra.mxu1 %v2707_v62  ;;  %v2742_v5 = vld [vmem:[#allocation3 + $0x60] sm:$0xff] }
 0x231   :  { %1058 = vmatpush.msra.mxu2 %v2276_v8  ;;  %1078 = vmatpush.msra.mxu3 %v2279_v9  ;;  %3284 = vst [vmem:[#allocation24_spill] sm:$0xff] %v2742_v5  ;;  %v2754_v8 = vld [vmem:[#allocation3 + $0x20] sm:$0xff] }
 0x232   :  { %1019 = vmatpush.msrb.mxu0 %v2712_v1  ;;  %1039 = vmatpush.msra.mxu1 %v2247_v63  ;;  %v2730_v63 = vld [vmem:[#allocation3 + $0xa0] sm:$0xff]  ;;  %3286 = vst [vmem:[#allocation15_spill] sm:$0xff] %v2754_v8 }
 0x233   :  { %1059 = vmatpush.msra.mxu2 %v2291_v12  ;;  %1079 = vmatpush.msra.mxu3 %v2293_v13  ;;  %3282 = vst [vmem:[#allocation14_spill] sm:$0xff] %v2730_v63  ;;  %v2760_v9 = vld [vmem:[#allocation3] sm:$0xff]  ;;  %v3288_v12 = vld [vmem:[#allocation36_spill] sm:$0xff] }
 0x234   :  { %1020 = vmatpush.msrb.mxu0 %v2718_v2  ;;  %1040 = vmatpush.msra.mxu1 %v2258_v3  ;;  %v2736_v3 = vld [vmem:[#allocation3 + $0x80] sm:$0xff]  ;;  %3287 = vst [vmem:[#allocation21_spill] sm:$0xff] %v2760_v9 }
 0x235   :  { %1060 = vmatpush.msra.mxu2 %v2299_v17  ;;  %1080 = vmatpush.msra.mxu3 %v2302_v19  ;;  %3283 = vst [vmem:[#allocation20_spill] sm:$0xff] %v2736_v3  ;;  %v3289_v19 = vld [vmem:[#allocation41_spill] sm:$0xff] }
 0x236   :  { %1021 = vmatpush.msrb.mxu0 %v2724_v4  ;;  %1041 = vmatpush.msra.mxu1 %v2269_v6  ;;  %v2748_v6 = vld [vmem:[#allocation3 + $0x40] sm:$0xff] }
 0x237   :  { %1061 = vmatpush.msra.mxu2 %v2315_v31  ;;  %1081 = vmatpush.msra.mxu3 %v2318_v27  ;;  %3285 = vst [vmem:[#allocation25_spill] sm:$0xff] %v2748_v6  ;;  %v3290_v27 = vld [vmem:[#allocation42_spill] sm:$0xff] }
 0x238   :  { %1022 = vmatpush.msrb.mxu0 %v2730_v63  ;;  %1042 = vmatpush.msra.mxu1 %v3255_v15 }
 0x239   :  { %1062 = vmatpush.msra.mxu2 %v3256_v18  ;;  %1082 = vmatpush.msra.mxu3 %v3257_v20 }
 0x23a   :  { %1023 = vmatpush.msrb.mxu0 %v2736_v3  ;;  %1043 = vmatpush.msra.mxu1 %v3259_v22 }
 0x23b   :  { %1063 = vmatpush.msra.mxu2 %v3260_v23  ;;  %1083 = vmatpush.msra.mxu3 %v3261_v24  ;;  %v3291_v23 = vld [vmem:[#allocation47_spill] sm:$0xff] }
 0x23c   :  { %1024 = vmatpush.msrb.mxu0 %v2742_v5  ;;  %1044 = vmatpush.msra.mxu1 %v3263_v38 }
 0x23d   :  { %1064 = vmatpush.msra.mxu2 %v3264_v40  ;;  %1084 = vmatpush.msra.mxu3 %v3265_v42 }
 0x23e   :  { %1025 = vmatpush.msrb.mxu0 %v2748_v6  ;;  %1045 = vmatpush.msra.mxu1 %v3267_v51 }
 0x23f   :  { %1065 = vmatpush.msra.mxu2 %v3268_v52  ;;  %1085 = vmatpush.msra.mxu3 %v3269_v56 }
 0x240   :  { %1026 = vmatpush.msrb.mxu0 %v2754_v8  ;;  %1046 = vmatpush.msra.mxu1 %v3271_v10 }
 0x241   :  { %1066 = vmatpush.msra.mxu2 %v3272_v47  ;;  %1086 = vmatpush.msra.mxu3 %v3273_v30 }
 0x242   :  { %1027 = vmatpush.msrb.mxu0 %v2760_v9  ;;  %1047 = vmatpush.msra.mxu1 %v3275_v41  ;;  %v3292_v41 = vld [vmem:[#allocation48_spill] sm:$0xff] }
 0x243   :  { %1067 = vmatpush.msra.mxu2 %v3276_v16  ;;  %1087 = vmatpush.msra.mxu3 %v3288_v12 }
 0x29f   :  { %v727_v13 = vpop.f32.mrf.mxu0  ;;  %v747_v17 = vpop.f32.mrf.mxu1 }
 0x2a0   :  { %v790_v31 = vadd.f32 %v727_v13, %v3289_v19  ;;  %v791_v15 = vadd.f32 %v747_v17, %v3290_v27 }
 0x2a2   :  { %v1717_v18 = vmul.f32 -1.442695, %v790_v31  ;;  %v1718_v20 = vmul.f32 -1.442695, %v791_v15 }
 0x2a4   :  { %1786 = vpow2.f32 %v1717_v18 }
 0x2a5   :  { %1788 = vpow2.f32 %v1718_v20 }
 0x2a6   :  { %v767_v22 = vpop.f32.mrf.mxu2  ;;  %v787_v56 = vpop.f32.mrf.mxu3 }
 0x2a7   :  { %v792_v24 = vadd.f32 %v767_v22, %v3291_v23  ;;  %v793_v16 = vadd.f32 %v787_v56, %v3292_v41  ;;  %v2788_v41 = vld [vmem:[#allocation3 + $0x1b0] sm:$0xff] }
 0x2a9   :  { %v1719_v38 = vmul.f32 -1.442695, %v792_v24 }
 0x2aa   :  { %v1787_v40 = vpop.eup %1786 }
 0x2ab   :  { %v1789_v42 = vpop.eup %1788  ;;  %v803_v51 = vadd.f32 1.0, %v1787_v40  ;;  %1790 = vpow2.f32 %v1719_v38 }
 0x2ac   :  { %v804_v52 = vadd.f32 1.0, %v1789_v42 }
 0x2ad   :  { %1792 = vrcp.f32 %v803_v51  ;;  %v817_v11 = vand.u32 2147483648, %v803_v51  ;;  %v815_v7 = vand.u32 2147483647, %v803_v51  ;;  %vm811_vm3 = vweird.f32 %v803_v51 }
 0x2ae   :  { %1794 = vrcp.f32 %v804_v52  ;;  %v832_v26 = vand.u32 2147483648, %v804_v52  ;;  %v830_v48 = vand.u32 2147483647, %v804_v52  ;;  %vm826_vm4 = vweird.f32 %v804_v52 }
 0x2af   :  { %v818_v53 = vor.u32 1.1754944e-38, %v817_v11  ;;  %vm816_vm7 = vcmp.eq.f32.partialorder %v815_v7, 8.507059e+37  ;;  %v2815_v11 = vld [vmem:[#allocation3 + $0x158] sm:$0xff]  ;;  %v2827_v7 = vld [vmem:[#allocation3 + $0x108] sm:$0xff] }
 0x2b0   :  { %v833_v13 = vor.u32 1.1754944e-38, %v832_v26  ;;  %vm831_vm8 = vcmp.eq.f32.partialorder %v830_v48, 8.507059e+37  ;;  %v2820_v26 = vld [vmem:[#allocation3 + $0x130] sm:$0xff]  ;;  %v2833_v48 = vld [vmem:[#allocation3 + $0x118] sm:$0xff] }
 0x2b1   :  { %v1791_v10 = vpop.eup %1790 }
 0x2b2   :  { %v805_v47 = vadd.f32 1.0, %v1791_v10 }
 0x2b3   :  { %v1793_v30 = vpop.eup %1792 }
 0x2b4   :  { %v1795_v33 = vpop.eup %1794  ;;  %v807_v50 = vmul.f32 %v1793_v30, %v803_v51  ;;  %1796 = vrcp.f32 %v805_v47  ;;  %vm812_vm1 = vweird.f32 %v1793_v30  ;;  %v847_v40 = vand.u32 2147483648, %v805_v47 }
 0x2b5   :  { %v822_v36 = vmul.f32 %v1795_v33, %v804_v52  ;;  %1798 = vtanh.f32 %v793_v16  ;;  %vm827_vm2 = vweird.f32 %v1795_v33  ;;  %vm813_vm5 = vmor %vm811_vm3, %vm812_vm1  ;;  %vm841_vm10 = vweird.f32 %v805_v47  ;;  %v2791_v16 = vld [vmem:[#allocation3 + $0x1b8] sm:$0xff] }
 0x2b6   :  { %v808_v46 = vsub.f32 1.0, %v807_v50  ;;  %vm828_vm6 = vmor %vm826_vm4, %vm827_vm2  ;;  %v845_v42 = vand.u32 2147483647, %v805_v47  ;;  %v848_v52 = vor.u32 1.1754944e-38, %v847_v40  ;;  %v2799_v50 = vld [vmem:[#allocation3 + $0x198] sm:$0xff]  ;;  %v2890_v40 = vld [vmem:[#allocation3 + $0x50] sm:$0xff] }
 0x2b7   :  { %v823_v49 = vsub.f32 1.0, %v822_v36  ;;  %v2804_v36 = vld [vmem:[#allocation3 + $0x170] sm:$0xff]  ;;  %3305 = vst [vmem:[#allocation34_spill] sm:$0xff] %v2890_v40 }
 0x2b8   :  { %v809_v43 = vmul.f32 %v1793_v30, %v808_v46  ;;  %vm846_vm12 = vcmp.eq.f32.partialorder %v845_v42, 8.507059e+37  ;;  %v2807_v46 = vld [vmem:[#allocation3 + $0x178] sm:$0xff] }
 0x2b9   :  { %v824_v21 = vmul.f32 %v1795_v33, %v823_v49  ;;  %v2812_v49 = vld [vmem:[#allocation3 + $0x150] sm:$0xff]  ;;  %v2893_v42 = vld [vmem:[#allocation3 + $0x58] sm:$0xff] }
 0x2ba   :  { %v1797_v28 = vpop.eup %1796  ;;  %v810_v59 = vadd.f32 %v1793_v30, %v809_v43  ;;  %v2823_v43 = vld [vmem:[#allocation3 + $0x138] sm:$0xff]  ;;  %3306 = vst [vmem:[#allocation35_spill] sm:$0xff] %v2893_v42 }
 0x2bb   :  { %v837_v60 = vmul.f32 %v1797_v28, %v805_v47  ;;  %v825_v12 = vadd.f32 %v1795_v33, %v824_v21  ;;  %v1799_v19 = vpop.eup %1798  ;;  %vm842_vm9 = vweird.f32 %v1797_v28  ;;  %v2783_v47 = vld [vmem:[#allocation3 + $0x1d8] sm:$0xff]  ;;  %v2830_v21 = vld [vmem:[#allocation3 + $0x110] sm:$0xff] }
 0x2bc   :  { %v814_v17 = vsel %vm813_vm5, %v1793_v30, %v810_v59  ;;  %vm843_vm11 = vmor %vm841_vm10, %vm842_vm9  ;;  %v2840_v59 = vld [vmem:[#allocation3 + $0xf0] sm:$0xff] }
 0x2bd   :  { %v838_v31 = vsub.f32 1.0, %v837_v60  ;;  %v819_v27 = vsel %vm816_vm7, %v818_v53, %v814_v17  ;;  %v829_v15 = vsel %vm828_vm6, %v1795_v33, %v825_v12  ;;  %v2796_v33 = vld [vmem:[#allocation3 + $0x190] sm:$0xff]  ;;  %v2843_v60 = vld [vmem:[#allocation3 + $0xf8] sm:$0xff]  ;;  %v2847_v53 = vld [vmem:[#allocation3 + $0xc8] sm:$0xff] }
 0x2be   :  { %v834_v18 = vsel %vm831_vm8, %v833_v13, %v829_v15  ;;  %v853_v20 = vmul.f32 %v1799_v19, %v819_v27  ;;  %v2850_v12 = vld [vmem:[#allocation3 + $0xd0] sm:$0xff]  ;;  %v2853_v13 = vld [vmem:[#allocation3 + $0xd8] sm:$0xff]  ;;  %v2857_v17 = vld [vmem:[#allocation3 + $0xa8] sm:$0xff] }
 0x2bf   :  { %v852_v22 = vmul.f32 %v834_v18, %v2649_v32  ;;  %v839_v23 = vmul.f32 %v1797_v28, %v838_v31  ;;  %v2780_v32 = vld [vmem:[#allocation3 + $0x1d0] sm:$0xff]  ;;  %3293 = vst [vmem:[#allocation27_spill] sm:$0xff] %v2850_v12  ;;  %v2863_v31 = vld [vmem:[#allocation3 + $0xb8] sm:$0xff]  ;;  %v2867_v27 = vld [vmem:[#allocation3 + $0x88] sm:$0xff] }
 0x2c0   :  { %3294 = vst [vmem:[#allocation28_spill] sm:$0xff] %v2853_v13  ;;  %v2860_v19 = vld [vmem:[#allocation3 + $0xb0] sm:$0xff]  ;;  %v2873_v18 = vld [vmem:[#allocation3 + $0x98] sm:$0xff] }
 0x2c1   :  { %v2771_v24 = vadd.f32 %v853_v20, %v852_v22  ;;  %v840_v38 = vadd.f32 %v1797_v28, %v839_v23  ;;  %3295 = vst [vmem:[#allocation16_spill] sm:$0xff] %v2857_v17  ;;  %v2870_v15 = vld [vmem:[#allocation3 + $0x90] sm:$0xff]  ;;  %v2877_v20 = vld [vmem:[#allocation3 + $0x68] sm:$0xff]  ;;  %v2883_v23 = vld [vmem:[#allocation3 + $0x78] sm:$0xff] }
 0x2c2   :  { %3296 = vst [vmem:[#allocation22_spill] sm:$0xff] %v2860_v19  ;;  %v2880_v22 = vld [vmem:[#allocation3 + $0x70] sm:$0xff] }
 0x2c3   :  { %1800 = vtanh.f32 %v2771_v24  ;;  %v844_v51 = vsel %vm843_vm11, %v1797_v28, %v840_v38  ;;  %v2837_v28 = vld [vmem:[#allocation3 + $0xe8] sm:$0xff]  ;;  %3297 = vst [vmem:[#allocation30_spill] sm:$0xff] %v2863_v31 }
 0x2c4   :  { %v849_v10 = vsel %vm846_vm12, %v848_v52, %v844_v51  ;;  %3298 = vst [vmem:[#allocation32_spill] sm:$0xff] %v2867_v27  ;;  %v2887_v38 = vld [vmem:[#allocation3 + $0x48] sm:$0xff]  ;;  %v2900_v52 = vld [vmem:[#allocation3 + $0x30] sm:$0xff] }
 0x2c5   :  { %3299 = vst [vmem:[#allocation17_spill] sm:$0xff] %v2870_v15  ;;  %v2897_v51 = vld [vmem:[#allocation3 + $0x28] sm:$0xff] }
 0x2c6   :  { %3300 = vst [vmem:[#allocation23_spill] sm:$0xff] %v2873_v18 }
 0x2c7   :  { %3301 = vst [vmem:[#allocation31_spill] sm:$0xff] %v2877_v20 }
 0x2c8   :  { %3302 = vst [vmem:[#allocation33_spill] sm:$0xff] %v2880_v22 }
 0x2c9   :  { %v1801_v56 = vpop.eup %1800  ;;  %3303 = vst [vmem:[#allocation18_spill] sm:$0xff] %v2883_v23 }
 0x2ca   :  { %v856_v30 = vmul.f32 %v1801_v56, %v849_v10  ;;  %3304 = vst [vmem:[#allocation26_spill] sm:$0xff] %v2887_v38  ;;  %v2903_v56 = vld [vmem:[#allocation3 + $0x38] sm:$0xff]  ;;  %v2907_v10 = vld [vmem:[#allocation3 + $0x8] sm:$0xff] }
 0x2cb   :  { %3307 = vst [vmem:[#allocation19_spill] sm:$0xff] %v2897_v51 }
 0x2cc   :  { %877 = vmatmul.f32.vlgmr.msra.gmra.mxu0 %v856_v30  ;;  %897 = vmatmul.f32.vlgmr.msrb.gmra.mxu1 %v856_v30  ;;  %3308 = vst [vmem:[#allocation29_spill] sm:$0xff] %v2900_v52 }
 0x2cd   :  { %917 = vmatmul.f32.vlgmr.msrb.gmra.mxu2 %v856_v30  ;;  %937 = vmatmul.f32.vlgmr.msrb.gmra.mxu3 %v856_v30  ;;  %3309 = vst [vmem:[#allocation37_spill] sm:$0xff] %v2903_v56  ;;  %v2910_v30 = vld [vmem:[#allocation3 + $0x10] sm:$0xff] }
 0x2ce   :  { %1163 = vmatpush.msra.mxu0 %v2652_v35  ;;  %1183 = vmatpush.msrb.mxu1 %v2655_v25  ;;  %3310 = vst [vmem:[#allocation13_spill] sm:$0xff] %v2907_v10 }
 0x2cf   :  { %1203 = vmatpush.msrb.mxu2 %v2658_v14  ;;  %1223 = vmatpush.msrb.mxu3 %v2661_v39  ;;  %3311 = vst [vmem:[#allocation40_spill] sm:$0xff] %v2910_v30 }
 0x2d0   :  { %1164 = vmatpush.msra.mxu0 %v2664_v37  ;;  %1184 = vmatpush.msrb.mxu1 %v2667_v34 }
 0x2d1   :  { %1204 = vmatpush.msrb.mxu2 %v2780_v32  ;;  %1224 = vmatpush.msrb.mxu3 %v2783_v47 }
 0x2d2   :  { %1165 = vmatpush.msra.mxu0 %v2672_v0  ;;  %1185 = vmatpush.msrb.mxu1 %v2675_v44 }
 0x2d3   :  { %1205 = vmatpush.msrb.mxu2 %v2788_v41  ;;  %1225 = vmatpush.msrb.mxu3 %v2791_v16 }
 0x2d4   :  { %1166 = vmatpush.msra.mxu0 %v2680_v45  ;;  %1186 = vmatpush.msrb.mxu1 %v2683_v29 }
 0x2d5   :  { %1206 = vmatpush.msrb.mxu2 %v2796_v33  ;;  %1226 = vmatpush.msrb.mxu3 %v2799_v50 }
 0x2d6   :  { %1167 = vmatpush.msra.mxu0 %v2688_v54  ;;  %1187 = vmatpush.msrb.mxu1 %v2691_v55 }
 0x2d7   :  { %1207 = vmatpush.msrb.mxu2 %v2804_v36  ;;  %1227 = vmatpush.msrb.mxu3 %v2807_v46 }
 0x2d8   :  { %1168 = vmatpush.msra.mxu0 %v2696_v57  ;;  %1188 = vmatpush.msrb.mxu1 %v2699_v58 }
 0x2d9   :  { %1208 = vmatpush.msrb.mxu2 %v2812_v49  ;;  %1228 = vmatpush.msrb.mxu3 %v2815_v11 }
 0x2da   :  { %1169 = vmatpush.msra.mxu0 %v2704_v61  ;;  %1189 = vmatpush.msrb.mxu1 %v2707_v62 }
 0x2db   :  { %1209 = vmatpush.msrb.mxu2 %v2820_v26  ;;  %1229 = vmatpush.msrb.mxu3 %v2823_v43 }
 0x2dc   :  { %1170 = vmatpush.msra.mxu0 %v2712_v1  ;;  %1190 = vmatpush.msrb.mxu1 %v2827_v7 }
 0x2dd   :  { %1210 = vmatpush.msrb.mxu2 %v2830_v21  ;;  %1230 = vmatpush.msrb.mxu3 %v2833_v48 }
 0x2de   :  { %1171 = vmatpush.msra.mxu0 %v2718_v2  ;;  %1191 = vmatpush.msrb.mxu1 %v2837_v28 }
 0x2df   :  { %1211 = vmatpush.msrb.mxu2 %v2840_v59  ;;  %1231 = vmatpush.msrb.mxu3 %v2843_v60 }
 0x2e0   :  { %1172 = vmatpush.msra.mxu0 %v2724_v4  ;;  %1192 = vmatpush.msrb.mxu1 %v2847_v53 }
 0x2e1   :  { %1212 = vmatpush.msrb.mxu2 %v2850_v12  ;;  %1232 = vmatpush.msrb.mxu3 %v2853_v13 }
 0x2e2   :  { %1173 = vmatpush.msra.mxu0 %v2730_v63  ;;  %1193 = vmatpush.msrb.mxu1 %v2857_v17 }
 0x2e3   :  { %1213 = vmatpush.msrb.mxu2 %v2860_v19  ;;  %1233 = vmatpush.msrb.mxu3 %v2863_v31 }
 0x2e4   :  { %1174 = vmatpush.msra.mxu0 %v2736_v3  ;;  %1194 = vmatpush.msrb.mxu1 %v2867_v27 }
 0x2e5   :  { %1214 = vmatpush.msrb.mxu2 %v2870_v15  ;;  %1234 = vmatpush.msrb.mxu3 %v2873_v18 }
 0x2e6   :  { %1175 = vmatpush.msra.mxu0 %v2742_v5  ;;  %1195 = vmatpush.msrb.mxu1 %v2877_v20 }
 0x2e7   :  { %1215 = vmatpush.msrb.mxu2 %v2880_v22  ;;  %1235 = vmatpush.msrb.mxu3 %v2883_v23 }
 0x2e8   :  { %1176 = vmatpush.msra.mxu0 %v2748_v6  ;;  %1196 = vmatpush.msrb.mxu1 %v2887_v38  ;;  %v3314_v38 = vld [vmem:[#allocation46_spill] sm:$0xff] }
 0x2e9   :  { %1216 = vmatpush.msrb.mxu2 %v2890_v40  ;;  %1236 = vmatpush.msrb.mxu3 %v2893_v42  ;;  %v3313_v42 = vld [vmem:[#allocation44_spill] sm:$0xff] }
 0x2ea   :  { %1177 = vmatpush.msra.mxu0 %v2754_v8  ;;  %1197 = vmatpush.msrb.mxu1 %v2897_v51  ;;  %v2913_v8 = vld [vmem:[#allocation3 + $0x18] sm:$0xff] }
 0x2eb   :  { %1217 = vmatpush.msrb.mxu2 %v2900_v52  ;;  %1237 = vmatpush.msrb.mxu3 %v2903_v56  ;;  %3312 = vst [vmem:[#allocation43_spill] sm:$0xff] %v2913_v8 }
 0x2ec   :  { %1178 = vmatpush.msra.mxu0 %v2760_v9  ;;  %1198 = vmatpush.msrb.mxu1 %v2907_v10  ;;  %v3315_v10 = vld [vmem:[#allocation51_spill] sm:$0xff] }
 0x2ed   :  { %1218 = vmatpush.msrb.mxu2 %v2910_v30  ;;  %1238 = vmatpush.msrb.mxu3 %v2913_v8 }
 0x349   :  { %v878_v51 = vpop.f32.mrf.mxu0  ;;  %v898_v52 = vpop.f32.mrf.mxu1 }
 0x34a   :  { %v941_v40 = vadd.f32 %v878_v51, %v3313_v42  ;;  %v942_v56 = vadd.f32 %v898_v52, %v3314_v38  ;;  %v3316_v38 = vld [vmem:[#allocation52_spill] sm:$0xff] }
 0x34c   :  { %v1720_v6 = vmul.f32 -1.442695, %v941_v40  ;;  %v1721_v9 = vmul.f32 -1.442695, %v942_v56 }
 0x34e   :  { %1802 = vpow2.f32 %v1720_v6 }
 0x34f   :  { %1804 = vpow2.f32 %v1721_v9 }
 0x350   :  { %v918_v23 = vpop.f32.mrf.mxu2  ;;  %v938_v8 = vpop.f32.mrf.mxu3 }
 0x351   :  { %v943_v22 = vadd.f32 %v918_v23, %v3315_v10  ;;  %v944_v40 = vadd.f32 %v938_v8, %v3316_v38 }
 0x353   :  { %v1722_v20 = vmul.f32 -1.442695, %v943_v22 }
 0x354   :  { %v1803_v5 = vpop.eup %1802 }
 0x355   :  { %v1805_v30 = vpop.eup %1804  ;;  %v954_v18 = vadd.f32 1.0, %v1803_v5  ;;  %1806 = vpow2.f32 %v1722_v20 }
 0x356   :  { %v955_v15 = vadd.f32 1.0, %v1805_v30 }
 0x357   :  { %1808 = vrcp.f32 %v954_v18  ;;  %v968_v22 = vand.u32 2147483648, %v954_v18  ;;  %v966_v20 = vand.u32 2147483647, %v954_v18  ;;  %vm962_vm15 = vweird.f32 %v954_v18 }
 0x358   :  { %1810 = vrcp.f32 %v955_v15  ;;  %v983_v10 = vand.u32 2147483648, %v955_v15  ;;  %v981_v3 = vand.u32 2147483647, %v955_v15  ;;  %vm977_vm0 = vweird.f32 %v955_v15 }
 0x359   :  { %v969_v38 = vor.u32 1.1754944e-38, %v968_v22  ;;  %vm967_vm3 = vcmp.eq.f32.partialorder %v966_v20, 8.507059e+37 }
 0x35a   :  { %vm982_vm4 = vcmp.eq.f32.partialorder %v981_v3, 8.507059e+37 }
 0x35b   :  { %v1807_v27 = vpop.eup %1806 }
 0x35c   :  { %v956_v42 = vadd.f32 1.0, %v1807_v27 }
 0x35d   :  { %v1809_v51 = vpop.eup %1808 }
 0x35e   :  { %v1811_v52 = vpop.eup %1810  ;;  %v958_v6 = vmul.f32 %v1809_v51, %v954_v18  ;;  %1812 = vrcp.f32 %v956_v42  ;;  %vm963_vm13 = vweird.f32 %v1809_v51  ;;  %v998_v22 = vand.u32 2147483648, %v956_v42 }
 0x35f   :  { %v973_v9 = vmul.f32 %v1811_v52, %v955_v15  ;;  %1814 = vtanh.f32 %v944_v40  ;;  %vm978_vm14 = vweird.f32 %v1811_v52  ;;  %vm964_vm1 = vmor %vm962_vm15, %vm963_vm13  ;;  %vm992_vm6 = vweird.f32 %v956_v42 }
 0x360   :  { %v959_v56 = vsub.f32 1.0, %v958_v6  ;;  %vm979_vm2 = vmor %vm977_vm0, %vm978_vm14  ;;  %v984_v6 = vor.u32 1.1754944e-38, %v983_v10  ;;  %v999_v20 = vor.u32 1.1754944e-38, %v998_v22  ;;  %v3335_v22 = vld [vmem:[#allocation15_spill] sm:$0xff] }
 0x361   :  { %v974_v23 = vsub.f32 1.0, %v973_v9 }
 0x362   :  { %v960_v5 = vmul.f32 %v1809_v51, %v959_v56 }
 0x363   :  { %v975_v30 = vmul.f32 %v1811_v52, %v974_v23 }
 0x364   :  { %v1813_v31 = vpop.eup %1812  ;;  %v961_v27 = vadd.f32 %v1809_v51, %v960_v5 }
 0x365   :  { %v988_v8 = vmul.f32 %v1813_v31, %v956_v42  ;;  %v976_v19 = vadd.f32 %v1811_v52, %v975_v30  ;;  %v1815_v40 = vpop.eup %1814  ;;  %vm993_vm5 = vweird.f32 %v1813_v31  ;;  %v3324_v30 = vld [vmem:[#allocation32_spill] sm:$0xff] }
 0x366   :  { %v965_v9 = vsel %vm964_vm1, %v1809_v51, %v961_v27  ;;  %v996_v51 = vand.u32 2147483647, %v956_v42  ;;  %vm994_vm7 = vmor %vm992_vm6, %vm993_vm5  ;;  %v3322_v42 = vld [vmem:[#allocation30_spill] sm:$0xff]  ;;  %v3325_v27 = vld [vmem:[#allocation17_spill] sm:$0xff] }
 0x367   :  { %v989_v17 = vsub.f32 1.0, %v988_v8  ;;  %v970_v56 = vsel %vm967_vm3, %v969_v38, %v965_v9  ;;  %v980_v63 = vsel %vm979_vm2, %v1811_v52, %v976_v19  ;;  %v3323_v52 = vld [vmem:[#allocation20_spill] sm:$0xff]  ;;  %v3326_v8 = vld [vmem:[#allocation23_spill] sm:$0xff]  ;;  %v3329_v9 = vld [vmem:[#allocation33_spill] sm:$0xff] }
 0x368   :  { %v985_v23 = vsel %vm982_vm4, %v984_v6, %v980_v63  ;;  %v1004_v13 = vmul.f32 %v1815_v40, %v970_v56  ;;  %vm997_vm8 = vcmp.eq.f32.partialorder %v996_v51, 8.507059e+37  ;;  %v3327_v38 = vld [vmem:[#allocation24_spill] sm:$0xff]  ;;  %v3328_v6 = vld [vmem:[#allocation31_spill] sm:$0xff]  ;;  %v3330_v40 = vld [vmem:[#allocation18_spill] sm:$0xff] }
 0x369   :  { %v1003_v12 = vmul.f32 %v985_v23, %v2771_v24  ;;  %v990_v5 = vmul.f32 %v1813_v31, %v989_v17  ;;  %v3317_v24 = vld [vmem:[#allocation27_spill] sm:$0xff]  ;;  %v3320_v17 = vld [vmem:[#allocation16_spill] sm:$0xff]  ;;  %v3331_v56 = vld [vmem:[#allocation25_spill] sm:$0xff] }
 0x36a   :  { %v3332_v23 = vld [vmem:[#allocation26_spill] sm:$0xff]  ;;  %v3336_v51 = vld [vmem:[#allocation19_spill] sm:$0xff] }
 0x36b   :  { %v2921_v18 = vadd.f32 %v1004_v13, %v1003_v12  ;;  %v991_v15 = vadd.f32 %v1813_v31, %v990_v5  ;;  %v3318_v12 = vld [vmem:[#allocation28_spill] sm:$0xff]  ;;  %v3319_v13 = vld [vmem:[#allocation14_spill] sm:$0xff] }
 0x36c   :  { %v3333_v5 = vld [vmem:[#allocation34_spill] sm:$0xff] }
 0x36d   :  { %1816 = vtanh.f32 %v2921_v18  ;;  %v995_v10 = vsel %vm994_vm7, %v1813_v31, %v991_v15  ;;  %v3321_v31 = vld [vmem:[#allocation22_spill] sm:$0xff]  ;;  %v3334_v15 = vld [vmem:[#allocation35_spill] sm:$0xff] }
 0x36e   :  { %v1000_v3 = vsel %vm997_vm8, %v999_v20, %v995_v10  ;;  %v3337_v10 = vld [vmem:[#allocation29_spill] sm:$0xff] }
 0x36f   :  { %v3338_v20 = vld [vmem:[#allocation37_spill] sm:$0xff] }
 0x373   :  { %v1817_v19 = vpop.eup %1816 }
 0x374   :  { %v1007_v63 = vmul.f32 %v1817_v19, %v1000_v3  ;;  %v3339_v19 = vld [vmem:[#allocation21_spill] sm:$0xff] }
 0x375   :  { %v3340_v3 = vld [vmem:[#allocation13_spill] sm:$0xff] }
 0x376   :  { %1028 = vmatmul.f32.vlgmr.msrb.gmra.mxu0 %v1007_v63  ;;  %1048 = vmatmul.f32.vlgmr.msra.gmra.mxu1 %v1007_v63 }
 0x377   :  { %1068 = vmatmul.f32.vlgmr.msra.gmra.mxu2 %v1007_v63  ;;  %1088 = vmatmul.f32.vlgmr.msra.gmra.mxu3 %v1007_v63  ;;  %v3341_v63 = vld [vmem:[#allocation40_spill] sm:$0xff] }
 0x378   :  { %1314 = vmatpush.msrb.mxu0 %v2652_v35  ;;  %1334 = vmatpush.msra.mxu1 %v2655_v25 }
 0x379   :  { %1354 = vmatpush.msra.mxu2 %v2658_v14  ;;  %1374 = vmatpush.msra.mxu3 %v2661_v39 }
 0x37a   :  { %1315 = vmatpush.msrb.mxu0 %v2664_v37  ;;  %1335 = vmatpush.msra.mxu1 %v2667_v34 }
 0x37b   :  { %1355 = vmatpush.msra.mxu2 %v2780_v32  ;;  %1375 = vmatpush.msra.mxu3 %v2783_v47 }
 0x37c   :  { %1316 = vmatpush.msrb.mxu0 %v2672_v0  ;;  %1336 = vmatpush.msra.mxu1 %v2675_v44 }
 0x37d   :  { %1356 = vmatpush.msra.mxu2 %v2788_v41  ;;  %1376 = vmatpush.msra.mxu3 %v2791_v16 }
 0x37e   :  { %1317 = vmatpush.msrb.mxu0 %v2680_v45  ;;  %1337 = vmatpush.msra.mxu1 %v2683_v29 }
 0x37f   :  { %1357 = vmatpush.msra.mxu2 %v2796_v33  ;;  %1377 = vmatpush.msra.mxu3 %v2799_v50 }
 0x380   :  { %1318 = vmatpush.msrb.mxu0 %v2688_v54  ;;  %1338 = vmatpush.msra.mxu1 %v2691_v55 }
 0x381   :  { %1358 = vmatpush.msra.mxu2 %v2804_v36  ;;  %1378 = vmatpush.msra.mxu3 %v2807_v46 }
 0x382   :  { %1319 = vmatpush.msrb.mxu0 %v2696_v57  ;;  %1339 = vmatpush.msra.mxu1 %v2699_v58 }
 0x383   :  { %1359 = vmatpush.msra.mxu2 %v2812_v49  ;;  %1379 = vmatpush.msra.mxu3 %v2815_v11 }
 0x384   :  { %1320 = vmatpush.msrb.mxu0 %v2704_v61  ;;  %1340 = vmatpush.msra.mxu1 %v2707_v62 }
 0x385   :  { %1360 = vmatpush.msra.mxu2 %v2820_v26  ;;  %1380 = vmatpush.msra.mxu3 %v2823_v43 }
 0x386   :  { %1321 = vmatpush.msrb.mxu0 %v2712_v1  ;;  %1341 = vmatpush.msra.mxu1 %v2827_v7 }
 0x387   :  { %1361 = vmatpush.msra.mxu2 %v2830_v21  ;;  %1381 = vmatpush.msra.mxu3 %v2833_v48 }
 0x388   :  { %1322 = vmatpush.msrb.mxu0 %v2718_v2  ;;  %1342 = vmatpush.msra.mxu1 %v2837_v28 }
 0x389   :  { %1362 = vmatpush.msra.mxu2 %v2840_v59  ;;  %1382 = vmatpush.msra.mxu3 %v2843_v60 }
 0x38a   :  { %1323 = vmatpush.msrb.mxu0 %v2724_v4  ;;  %1343 = vmatpush.msra.mxu1 %v2847_v53 }
 0x38b   :  { %1363 = vmatpush.msra.mxu2 %v3317_v24  ;;  %1383 = vmatpush.msra.mxu3 %v3318_v12 }
 0x38c   :  { %1324 = vmatpush.msrb.mxu0 %v3319_v13  ;;  %1344 = vmatpush.msra.mxu1 %v3320_v17 }
 0x38d   :  { %1364 = vmatpush.msra.mxu2 %v3321_v31  ;;  %1384 = vmatpush.msra.mxu3 %v3322_v42 }
 0x38e   :  { %1325 = vmatpush.msrb.mxu0 %v3323_v52  ;;  %1345 = vmatpush.msra.mxu1 %v3324_v30 }
 0x38f   :  { %1365 = vmatpush.msra.mxu2 %v3325_v27  ;;  %1385 = vmatpush.msra.mxu3 %v3326_v8 }
 0x390   :  { %1326 = vmatpush.msrb.mxu0 %v3327_v38  ;;  %1346 = vmatpush.msra.mxu1 %v3328_v6 }
 0x391   :  { %1366 = vmatpush.msra.mxu2 %v3329_v9  ;;  %1386 = vmatpush.msra.mxu3 %v3330_v40  ;;  %v3343_v40 = vld [vmem:[#allocation49_spill] sm:$0xff]  ;;  %v3344_v9 = vld [vmem:[#allocation50_spill] sm:$0xff] }
 0x392   :  { %1327 = vmatpush.msrb.mxu0 %v3331_v56  ;;  %1347 = vmatpush.msra.mxu1 %v3332_v23  ;;  %v3342_v56 = vld [vmem:[#allocation43_spill] sm:$0xff] }
 0x393   :  { %1367 = vmatpush.msra.mxu2 %v3333_v5  ;;  %1387 = vmatpush.msra.mxu3 %v3334_v15 }
 0x394   :  { %1328 = vmatpush.msrb.mxu0 %v3335_v22  ;;  %1348 = vmatpush.msra.mxu1 %v3336_v51 }
 0x395   :  { %1368 = vmatpush.msra.mxu2 %v3337_v10  ;;  %1388 = vmatpush.msra.mxu3 %v3338_v20  ;;  %v3345_v20 = vld [vmem:[#allocation54_spill] sm:$0xff] }
 0x396   :  { %1329 = vmatpush.msrb.mxu0 %v3339_v19  ;;  %1349 = vmatpush.msra.mxu1 %v3340_v3 }
 0x397   :  { %1369 = vmatpush.msra.mxu2 %v3341_v63  ;;  %1389 = vmatpush.msra.mxu3 %v3342_v56 }
 0x3f3   :  { %v1029_v23 = vpop.f32.mrf.mxu0  ;;  %v1049_v5 = vpop.f32.mrf.mxu1 }
 0x3f4   :  { %v1092_v15 = vadd.f32 %v1029_v23, %v3343_v40  ;;  %v1093_v22 = vadd.f32 %v1049_v5, %v3344_v9  ;;  %v3346_v9 = vld [vmem:[#allocation55_spill] sm:$0xff] }
 0x3f6   :  { %v1723_v6 = vmul.f32 -1.442695, %v1092_v15  ;;  %v1724_v51 = vmul.f32 -1.442695, %v1093_v22 }
 0x3f8   :  { %1818 = vpow2.f32 %v1723_v6 }
 0x3f9   :  { %1820 = vpow2.f32 %v1724_v51 }
 0x3fa   :  { %v1069_v10 = vpop.f32.mrf.mxu2  ;;  %v1089_v56 = vpop.f32.mrf.mxu3 }
 0x3fb   :  { %v1094_v38 = vadd.f32 %v1069_v10, %v3345_v20  ;;  %v1095_v5 = vadd.f32 %v1089_v56, %v3346_v9 }
 0x3fd   :  { %v1725_v19 = vmul.f32 -1.442695, %v1094_v38 }
 0x3fe   :  { %v1819_v8 = vpop.eup %1818 }
 0x3ff   :  { %v1821_v3 = vpop.eup %1820  ;;  %v1105_v27 = vadd.f32 1.0, %v1819_v8  ;;  %1822 = vpow2.f32 %v1725_v19 }
 0x400   :  { %v1106_v63 = vadd.f32 1.0, %v1821_v3 }
 0x401   :  { %1824 = vrcp.f32 %v1105_v27  ;;  %v1119_v38 = vand.u32 2147483648, %v1105_v27  ;;  %v1117_v19 = vand.u32 2147483647, %v1105_v27  ;;  %vm1113_vm11 = vweird.f32 %v1105_v27 }
 0x402   :  { %1826 = vrcp.f32 %v1106_v63  ;;  %v1134_v20 = vand.u32 2147483648, %v1106_v63  ;;  %v1132_v52 = vand.u32 2147483647, %v1106_v63  ;;  %vm1128_vm12 = vweird.f32 %v1106_v63 }
 0x403   :  { %v1120_v9 = vor.u32 1.1754944e-38, %v1119_v38  ;;  %vm1118_vm15 = vcmp.eq.f32.partialorder %v1117_v19, 8.507059e+37 }
 0x404   :  { %vm1133_vm0 = vcmp.eq.f32.partialorder %v1132_v52, 8.507059e+37 }
 0x405   :  { %v1823_v30 = vpop.eup %1822 }
 0x406   :  { %v1107_v40 = vadd.f32 1.0, %v1823_v30 }
 0x407   :  { %v1825_v23 = vpop.eup %1824 }
 0x408   :  { %v1827_v15 = vpop.eup %1826  ;;  %v1109_v6 = vmul.f32 %v1825_v23, %v1105_v27  ;;  %1828 = vrcp.f32 %v1107_v40  ;;  %vm1114_vm9 = vweird.f32 %v1825_v23  ;;  %v1149_v38 = vand.u32 2147483648, %v1107_v40 }
 0x409   :  { %v1124_v22 = vmul.f32 %v1827_v15, %v1106_v63  ;;  %1830 = vtanh.f32 %v1095_v5  ;;  %vm1129_vm10 = vweird.f32 %v1827_v15  ;;  %vm1115_vm13 = vmor %vm1113_vm11, %vm1114_vm9  ;;  %vm1143_vm2 = vweird.f32 %v1107_v40 }
 0x40a   :  { %v1110_v51 = vsub.f32 1.0, %v1109_v6  ;;  %vm1130_vm14 = vmor %vm1128_vm12, %vm1129_vm10  ;;  %v1135_v6 = vor.u32 1.1754944e-38, %v1134_v20  ;;  %v1150_v19 = vor.u32 1.1754944e-38, %v1149_v38 }
 0x40b   :  { %v1125_v10 = vsub.f32 1.0, %v1124_v22 }
 0x40c   :  { %v1111_v8 = vmul.f32 %v1825_v23, %v1110_v51 }
 0x40d   :  { %v1126_v3 = vmul.f32 %v1827_v15, %v1125_v10 }
 0x40e   :  { %v1829_v42 = vpop.eup %1828  ;;  %v1112_v30 = vadd.f32 %v1825_v23, %v1111_v8 }
 0x40f   :  { %v1139_v56 = vmul.f32 %v1829_v42, %v1107_v40  ;;  %v1127_v31 = vadd.f32 %v1827_v15, %v1126_v3  ;;  %v1831_v5 = vpop.eup %1830  ;;  %vm1144_vm1 = vweird.f32 %v1829_v42 }
 0x410   :  { %v1116_v22 = vsel %vm1115_vm13, %v1825_v23, %v1112_v30  ;;  %v1147_v23 = vand.u32 2147483647, %v1107_v40  ;;  %vm1145_vm3 = vmor %vm1143_vm2, %vm1144_vm1  ;;  %v3376_v30 = vld [vmem:[#allocation58_spill] sm:$0xff] }
 0x411   :  { %v1140_v17 = vsub.f32 1.0, %v1139_v56  ;;  %v1121_v51 = vsel %vm1118_vm15, %v1120_v9, %v1116_v22  ;;  %v1131_v13 = vsel %vm1130_vm14, %v1827_v15, %v1127_v31 }
 0x412   :  { %v1136_v10 = vsel %vm1133_vm0, %v1135_v6, %v1131_v13  ;;  %v1155_v12 = vmul.f32 %v1831_v5, %v1121_v51  ;;  %vm1148_vm4 = vcmp.eq.f32.partialorder %v1147_v23, 8.507059e+37 }
 0x413   :  { %v1154_v24 = vmul.f32 %v1136_v10, %v2921_v18  ;;  %v1141_v8 = vmul.f32 %v1829_v42, %v1140_v17 }
 0x415   :  { %v2993_v27 = vadd.f32 %v1155_v12, %v1154_v24  ;;  %v1142_v63 = vadd.f32 %v1829_v42, %v1141_v8 }
 0x417   :  { %1832 = vtanh.f32 %v2993_v27  ;;  %v1146_v20 = vsel %vm1145_vm3, %v1829_v42, %v1142_v63 }
 0x418   :  { %v1151_v52 = vsel %vm1148_vm4, %v1150_v19, %v1146_v20 }
 0x41d   :  { %v1833_v31 = vpop.eup %1832 }
 0x41e   :  { %v1158_v13 = vmul.f32 %v1833_v31, %v1151_v52 }
 0x420   :  { %1179 = vmatmul.f32.vlgmr.msra.gmra.mxu0 %v1158_v13  ;;  %1199 = vmatmul.f32.vlgmr.msrb.gmra.mxu1 %v1158_v13 }
 0x421   :  { %1219 = vmatmul.f32.vlgmr.msrb.gmra.mxu2 %v1158_v13  ;;  %1239 = vmatmul.f32.vlgmr.msrb.gmra.mxu3 %v1158_v13 }
 0x422   :  { %1465 = vmatpush.msra.mxu0 %v2652_v35  ;;  %1485 = vmatpush.msrb.mxu1 %v2655_v25  ;;  %v3347_v35 = vld [vmem:[#allocation27_spill] sm:$0xff]  ;;  %v3348_v25 = vld [vmem:[#allocation28_spill] sm:$0xff] }
 0x423   :  { %1505 = vmatpush.msrb.mxu2 %v2658_v14  ;;  %1525 = vmatpush.msrb.mxu3 %v2661_v39  ;;  %v3349_v14 = vld [vmem:[#allocation14_spill] sm:$0xff]  ;;  %v3350_v39 = vld [vmem:[#allocation16_spill] sm:$0xff] }
 0x424   :  { %1466 = vmatpush.msra.mxu0 %v2664_v37  ;;  %1486 = vmatpush.msrb.mxu1 %v2667_v34  ;;  %v3351_v37 = vld [vmem:[#allocation22_spill] sm:$0xff] }
 0x425   :  { %1506 = vmatpush.msrb.mxu2 %v2780_v32  ;;  %1526 = vmatpush.msrb.mxu3 %v2783_v47  ;;  %v3352_v34 = vld [vmem:[#allocation30_spill] sm:$0xff]  ;;  %v3366_v32 = vld [vmem:[#allocation19_spill] sm:$0xff]  ;;  %v3367_v47 = vld [vmem:[#allocation29_spill] sm:$0xff] }
 0x426   :  { %1467 = vmatpush.msra.mxu0 %v2672_v0  ;;  %1487 = vmatpush.msrb.mxu1 %v2675_v44  ;;  %v3353_v0 = vld [vmem:[#allocation20_spill] sm:$0xff] }
 0x427   :  { %1507 = vmatpush.msrb.mxu2 %v2788_v41  ;;  %1527 = vmatpush.msrb.mxu3 %v2791_v16  ;;  %v3354_v44 = vld [vmem:[#allocation32_spill] sm:$0xff]  ;;  %v3368_v41 = vld [vmem:[#allocation37_spill] sm:$0xff] }
 0x428   :  { %1468 = vmatpush.msra.mxu0 %v2680_v45  ;;  %1488 = vmatpush.msrb.mxu1 %v2683_v29  ;;  %v3355_v45 = vld [vmem:[#allocation17_spill] sm:$0xff]  ;;  %v3356_v29 = vld [vmem:[#allocation23_spill] sm:$0xff] }
 0x429   :  { %1508 = vmatpush.msrb.mxu2 %v2796_v33  ;;  %1528 = vmatpush.msrb.mxu3 %v2799_v50  ;;  %v3369_v16 = vld [vmem:[#allocation21_spill] sm:$0xff]  ;;  %v3371_v50 = vld [vmem:[#allocation40_spill] sm:$0xff] }
 0x42a   :  { %1469 = vmatpush.msra.mxu0 %v2688_v54  ;;  %1489 = vmatpush.msrb.mxu1 %v2691_v55  ;;  %v3357_v54 = vld [vmem:[#allocation24_spill] sm:$0xff]  ;;  %v3358_v55 = vld [vmem:[#allocation31_spill] sm:$0xff]  ;;  %v3370_v33 = vld [vmem:[#allocation13_spill] sm:$0xff] }
 0x42b   :  { %1509 = vmatpush.msrb.mxu2 %v2804_v36  ;;  %1529 = vmatpush.msrb.mxu3 %v2807_v46  ;;  %v3372_v36 = vld [vmem:[#allocation43_spill] sm:$0xff] }
 0x42c   :  { %1470 = vmatpush.msra.mxu0 %v2696_v57  ;;  %1490 = vmatpush.msrb.mxu1 %v2699_v58  ;;  %v3359_v57 = vld [vmem:[#allocation33_spill] sm:$0xff]  ;;  %v3360_v58 = vld [vmem:[#allocation18_spill] sm:$0xff] }
 0x42d   :  { %1510 = vmatpush.msrb.mxu2 %v2812_v49  ;;  %1530 = vmatpush.msrb.mxu3 %v2815_v11  ;;  %v3373_v11 = vld [vmem:[#allocation12_spill] sm:$0xff] }
 0x42e   :  { %1471 = vmatpush.msra.mxu0 %v2704_v61  ;;  %1491 = vmatpush.msrb.mxu1 %v2707_v62  ;;  %v3361_v61 = vld [vmem:[#allocation25_spill] sm:$0xff]  ;;  %v3362_v62 = vld [vmem:[#allocation26_spill] sm:$0xff] }
 0x42f   :  { %1511 = vmatpush.msrb.mxu2 %v2820_v26  ;;  %1531 = vmatpush.msrb.mxu3 %v2823_v43  ;;  %v3374_v43 = vld [vmem:[#allocation53_spill] sm:$0xff] }
 0x430   :  { %1472 = vmatpush.msra.mxu0 %v2712_v1  ;;  %1492 = vmatpush.msrb.mxu1 %v2827_v7  ;;  %v3363_v1 = vld [vmem:[#allocation34_spill] sm:$0xff] }
 0x431   :  { %1512 = vmatpush.msrb.mxu2 %v2830_v21  ;;  %1532 = vmatpush.msrb.mxu3 %v2833_v48 }
 0x432   :  { %1473 = vmatpush.msra.mxu0 %v2718_v2  ;;  %1493 = vmatpush.msrb.mxu1 %v2837_v28  ;;  %v3364_v2 = vld [vmem:[#allocation35_spill] sm:$0xff] }
 0x433   :  { %1513 = vmatpush.msrb.mxu2 %v2840_v59  ;;  %1533 = vmatpush.msrb.mxu3 %v2843_v60  ;;  %v3375_v59 = vld [vmem:[#allocation57_spill] sm:$0xff] }
 0x434   :  { %1474 = vmatpush.msra.mxu0 %v2724_v4  ;;  %1494 = vmatpush.msrb.mxu1 %v2847_v53  ;;  %v3365_v4 = vld [vmem:[#allocation15_spill] sm:$0xff] }
 0x435   :  { %1514 = vmatpush.msrb.mxu2 %v3347_v35  ;;  %1534 = vmatpush.msrb.mxu3 %v3348_v25 }
 0x436   :  { %1475 = vmatpush.msra.mxu0 %v3349_v14  ;;  %1495 = vmatpush.msrb.mxu1 %v3350_v39 }
 0x437   :  { %1515 = vmatpush.msrb.mxu2 %v3351_v37  ;;  %1535 = vmatpush.msrb.mxu3 %v3352_v34 }
 0x438   :  { %1476 = vmatpush.msra.mxu0 %v3353_v0  ;;  %1496 = vmatpush.msrb.mxu1 %v3354_v44 }
 0x439   :  { %1516 = vmatpush.msrb.mxu2 %v3355_v45  ;;  %1536 = vmatpush.msrb.mxu3 %v3356_v29 }
 0x43a   :  { %1477 = vmatpush.msra.mxu0 %v3357_v54  ;;  %1497 = vmatpush.msrb.mxu1 %v3358_v55 }
 0x43b   :  { %1517 = vmatpush.msrb.mxu2 %v3359_v57  ;;  %1537 = vmatpush.msrb.mxu3 %v3360_v58 }
 0x43c   :  { %1478 = vmatpush.msra.mxu0 %v3361_v61  ;;  %1498 = vmatpush.msrb.mxu1 %v3362_v62 }
 0x43d   :  { %1518 = vmatpush.msrb.mxu2 %v3363_v1  ;;  %1538 = vmatpush.msrb.mxu3 %v3364_v2 }
 0x43e   :  { %1479 = vmatpush.msra.mxu0 %v3365_v4  ;;  %1499 = vmatpush.msrb.mxu1 %v3366_v32 }
 0x43f   :  { %1519 = vmatpush.msrb.mxu2 %v3367_v47  ;;  %1539 = vmatpush.msrb.mxu3 %v3368_v41  ;;  %v3377_v41 = vld [vmem:[#allocation38_spill] sm:$0xff] }
 0x440   :  { %1480 = vmatpush.msra.mxu0 %v3369_v16  ;;  %1500 = vmatpush.msrb.mxu1 %v3370_v33  ;;  %v3378_v33 = vld [vmem:[#allocation56_spill] sm:$0xff] }
 0x441   :  { %1520 = vmatpush.msrb.mxu2 %v3371_v50  ;;  %1540 = vmatpush.msrb.mxu3 %v3372_v36 }
 0x49d   :  { %v1180_v46 = vpop.f32.mrf.mxu0  ;;  %v1200_v49 = vpop.f32.mrf.mxu1 }
 0x49e   :  { %v1243_v26 = vadd.f32 %v1180_v46, %v3373_v11  ;;  %v1244_v7 = vadd.f32 %v1200_v49, %v3374_v43  ;;  %v3379_v11 = vld [vmem:[#allocation60_spill] sm:$0xff] }
 0x4a0   :  { %v1726_v21 = vmul.f32 -1.442695, %v1243_v26  ;;  %v1727_v48 = vmul.f32 -1.442695, %v1244_v7 }
 0x4a2   :  { %1834 = vpow2.f32 %v1726_v21 }
 0x4a3   :  { %1836 = vpow2.f32 %v1727_v48 }
 0x4a4   :  { %v1220_v28 = vpop.f32.mrf.mxu2  ;;  %v1240_v42 = vpop.f32.mrf.mxu3 }
 0x4a5   :  { %v1245_v60 = vadd.f32 %v1220_v28, %v3375_v59  ;;  %v1246_v56 = vadd.f32 %v1240_v42, %v3376_v30 }
 0x4a7   :  { %v1728_v53 = vmul.f32 -1.442695, %v1245_v60 }
 0x4a8   :  { %v1835_v18 = vpop.eup %1834 }
 0x4a9   :  { %v1837_v24 = vpop.eup %1836  ;;  %v1256_v12 = vadd.f32 1.0, %v1835_v18  ;;  %1838 = vpow2.f32 %v1728_v53 }
 0x4aa   :  { %v1257_v17 = vadd.f32 1.0, %v1837_v24  ;;  %v3380_v24 = vld [vmem:[#allocation61_spill] sm:$0xff] }
 0x4ab   :  { %1840 = vrcp.f32 %v1256_v12  ;;  %v1270_v10 = vand.u32 2147483648, %v1256_v12  ;;  %v1268_v38 = vand.u32 2147483647, %v1256_v12  ;;  %vm1264_vm7 = vweird.f32 %v1256_v12 }
 0x4ac   :  { %1842 = vrcp.f32 %v1257_v17  ;;  %v1285_v8 = vand.u32 2147483648, %v1257_v17  ;;  %v1283_v20 = vand.u32 2147483647, %v1257_v17  ;;  %vm1279_vm8 = vweird.f32 %v1257_v17 }
 0x4ad   :  { %v1271_v13 = vor.u32 1.1754944e-38, %v1270_v10  ;;  %vm1269_vm11 = vcmp.eq.f32.partialorder %v1268_v38, 8.507059e+37 }
 0x4ae   :  { %v1286_v25 = vor.u32 1.1754944e-38, %v1285_v8  ;;  %vm1284_vm12 = vcmp.eq.f32.partialorder %v1283_v20, 8.507059e+37 }
 0x4af   :  { %v1839_v40 = vpop.eup %1838 }
 0x4b0   :  { %v1258_v15 = vadd.f32 1.0, %v1839_v40 }
 0x4b1   :  { %v1841_v3 = vpop.eup %1840 }
 0x4b2   :  { %v1843_v9 = vpop.eup %1842  ;;  %v1260_v6 = vmul.f32 %v1841_v3, %v1256_v12  ;;  %1844 = vrcp.f32 %v1258_v15  ;;  %vm1265_vm5 = vweird.f32 %v1841_v3  ;;  %v1300_v58 = vand.u32 2147483648, %v1258_v15 }
 0x4b3   :  { %v1275_v22 = vmul.f32 %v1843_v9, %v1257_v17  ;;  %1846 = vtanh.f32 %v1246_v56  ;;  %vm1280_vm6 = vweird.f32 %v1843_v9  ;;  %vm1266_vm9 = vmor %vm1264_vm7, %vm1265_vm5  ;;  %vm1294_vm14 = vweird.f32 %v1258_v15 }
 0x4b4   :  { %v1261_v5 = vsub.f32 1.0, %v1260_v6  ;;  %vm1281_vm10 = vmor %vm1279_vm8, %vm1280_vm6  ;;  %v1298_v61 = vand.u32 2147483647, %v1258_v15  ;;  %v1301_v1 = vor.u32 1.1754944e-38, %v1300_v58 }
 0x4b5   :  { %v1276_v51 = vsub.f32 1.0, %v1275_v22 }
 0x4b6   :  { %v1262_v63 = vmul.f32 %v1841_v3, %v1261_v5  ;;  %vm1299_vm0 = vcmp.eq.f32.partialorder %v1298_v61, 8.507059e+37  ;;  %v1626_v61 = vld [vmem:[#allocation6 + $0x70] sm:$0xff] }
 0x4b7   :  { %v1277_v23 = vmul.f32 %v1843_v9, %v1276_v51 }
 0x4b8   :  { %v1845_v19 = vpop.eup %1844  ;;  %v1263_v31 = vadd.f32 %v1841_v3, %v1262_v63 }
 0x4b9   :  { %v1290_v52 = vmul.f32 %v1845_v19, %v1258_v15  ;;  %v1278_v35 = vadd.f32 %v1843_v9, %v1277_v23  ;;  %v1847_v39 = vpop.eup %1846  ;;  %vm1295_vm13 = vweird.f32 %v1845_v19 }
 0x4ba   :  { %v1267_v14 = vsel %vm1266_vm9, %v1841_v3, %v1263_v31  ;;  %vm1296_vm15 = vmor %vm1294_vm14, %vm1295_vm13 }
 0x4bb   :  { %v1291_v37 = vsub.f32 1.0, %v1290_v52  ;;  %v1272_v34 = vsel %vm1269_vm11, %v1271_v13, %v1267_v14  ;;  %v1282_v0 = vsel %vm1281_vm10, %v1843_v9, %v1278_v35 }
 0x4bc   :  { %v1287_v44 = vsel %vm1284_vm12, %v1286_v25, %v1282_v0  ;;  %v1306_v45 = vmul.f32 %v1847_v39, %v1272_v34 }
 0x4bd   :  { %v1305_v29 = vmul.f32 %v1287_v44, %v2993_v27  ;;  %v1292_v54 = vmul.f32 %v1845_v19, %v1291_v37 }
 0x4bf   :  { %v3065_v55 = vadd.f32 %v1306_v45, %v1305_v29  ;;  %v1293_v57 = vadd.f32 %v1845_v19, %v1292_v54 }
 0x4c1   :  { %1848 = vtanh.f32 %v3065_v55  ;;  %v1297_v62 = vsel %vm1296_vm15, %v1845_v19, %v1293_v57 }
 0x4c2   :  { %v1302_v4 = vsel %vm1299_vm0, %v1301_v1, %v1297_v62  ;;  %v1625_v62 = vld [vmem:[#allocation6 + $0x68] sm:$0xff]  ;;  %v1624_v1 = vld [vmem:[#allocation6 + $0x60] sm:$0xff] }
 0x4c7   :  { %v1849_v2 = vpop.eup %1848 }
 0x4c8   :  { %v1309_v32 = vmul.f32 %v1849_v2, %v1302_v4  ;;  %v1623_v2 = vld [vmem:[#allocation6 + $0x58] sm:$0xff]  ;;  %v1622_v4 = vld [vmem:[#allocation6 + $0x50] sm:$0xff] }
 0x4ca   :  { %1330 = vmatmul.f32.vlgmr.msrb.gmra.mxu0 %v1309_v32  ;;  %1350 = vmatmul.f32.vlgmr.msra.gmra.mxu1 %v1309_v32 }
 0x4cb   :  { %1370 = vmatmul.f32.vlgmr.msra.gmra.mxu2 %v1309_v32  ;;  %1390 = vmatmul.f32.vlgmr.msra.gmra.mxu3 %v1309_v32  ;;  %v1621_v32 = vld [vmem:[#allocation6 + $0x48] sm:$0xff] }
 0x547   :  { %v1331_v27 = vpop.f32.mrf.mxu0  ;;  %v1351_v47 = vpop.f32.mrf.mxu1 }
 0x548   :  { %v1394_v16 = vadd.f32 %v1331_v27, %v3377_v41  ;;  %v1395_v50 = vadd.f32 %v1351_v47, %v3378_v33  ;;  %v1620_v27 = vld [vmem:[#allocation6 + $0x40] sm:$0xff]  ;;  %v1619_v47 = vld [vmem:[#allocation6 + $0x38] sm:$0xff]  ;;  %v1618_v41 = vld [vmem:[#allocation6 + $0x30] sm:$0xff] }
 0x54a   :  { %v1729_v36 = vmul.f32 -1.442695, %v1394_v16  ;;  %v1730_v46 = vmul.f32 -1.442695, %v1395_v50  ;;  %v3381_v50 = vld [vmem:[#allocation39_spill] sm:$0xff] }
 0x54c   :  { %1850 = vpow2.f32 %v1729_v36 }
 0x54d   :  { %1852 = vpow2.f32 %v1730_v46  ;;  %v3382_v46 = vld [vmem:[#allocation59_spill] sm:$0xff] }
 0x54e   :  { %v1371_v49 = vpop.f32.mrf.mxu2  ;;  %v1391_v59 = vpop.f32.mrf.mxu3 }
 0x54f   :  { %v1396_v26 = vadd.f32 %v1371_v49, %v3379_v11  ;;  %v1397_v12 = vadd.f32 %v1391_v59, %v3380_v24  ;;  %v1617_v11 = vld [vmem:[#allocation6 + $0x28] sm:$0xff] }
 0x550   :  { %v1613_v59 = vld [vmem:[#allocation6 + $0x8] sm:$0xff] }
 0x551   :  { %v1731_v43 = vmul.f32 -1.442695, %v1396_v26 }
 0x552   :  { %v1851_v7 = vpop.eup %1850 }
 0x553   :  { %v1853_v21 = vpop.eup %1852  ;;  %v1407_v48 = vadd.f32 1.0, %v1851_v7  ;;  %1854 = vpow2.f32 %v1731_v43  ;;  %v1616_v7 = vld [vmem:[#allocation6 + $0x20] sm:$0xff] }
 0x554   :  { %v1408_v28 = vadd.f32 1.0, %v1853_v21  ;;  %v1615_v21 = vld [vmem:[#allocation6 + $0x18] sm:$0xff] }
 0x555   :  { %1856 = vrcp.f32 %v1407_v48  ;;  %v1421_v30 = vand.u32 2147483648, %v1407_v48  ;;  %v1419_v6 = vand.u32 2147483647, %v1407_v48  ;;  %vm1415_vm3 = vweird.f32 %v1407_v48 }
 0x556   :  { %1858 = vrcp.f32 %v1408_v28  ;;  %v1436_v56 = vand.u32 2147483648, %v1408_v28  ;;  %v1434_v5 = vand.u32 2147483647, %v1408_v28  ;;  %vm1430_vm4 = vweird.f32 %v1408_v28 }
 0x557   :  { %v1422_v63 = vor.u32 1.1754944e-38, %v1421_v30  ;;  %vm1420_vm7 = vcmp.eq.f32.partialorder %v1419_v6, 8.507059e+37 }
 0x558   :  { %v1437_v23 = vor.u32 1.1754944e-38, %v1436_v56  ;;  %vm1435_vm8 = vcmp.eq.f32.partialorder %v1434_v5, 8.507059e+37 }
 0x559   :  { %v1855_v60 = vpop.eup %1854 }
 0x55a   :  { %v1409_v53 = vadd.f32 1.0, %v1855_v60  ;;  %v3383_v60 = vld [vmem:[#allocation62_spill] sm:$0xff] }
 0x55b   :  { %v1857_v18 = vpop.eup %1856 }
 0x55c   :  { %v1859_v17 = vpop.eup %1858  ;;  %v1411_v42 = vmul.f32 %v1857_v18, %v1407_v48  ;;  %1860 = vrcp.f32 %v1409_v53  ;;  %vm1416_vm1 = vweird.f32 %v1857_v18  ;;  %v1451_v0 = vand.u32 2147483648, %v1409_v53  ;;  %v1614_v48 = vld [vmem:[#allocation6 + $0x10] sm:$0xff] }
 0x55d   :  { %v1426_v40 = vmul.f32 %v1859_v17, %v1408_v28  ;;  %1862 = vtanh.f32 %v1397_v12  ;;  %vm1431_vm2 = vweird.f32 %v1859_v17  ;;  %vm1417_vm5 = vmor %vm1415_vm3, %vm1416_vm1  ;;  %vm1445_vm10 = vweird.f32 %v1409_v53 }
 0x55e   :  { %v1412_v15 = vsub.f32 1.0, %v1411_v42  ;;  %vm1432_vm6 = vmor %vm1430_vm4, %vm1431_vm2  ;;  %v1449_v44 = vand.u32 2147483647, %v1409_v53  ;;  %v1452_v29 = vor.u32 1.1754944e-38, %v1451_v0 }
 0x55f   :  { %v1427_v3 = vsub.f32 1.0, %v1426_v40 }
 0x560   :  { %v1413_v9 = vmul.f32 %v1857_v18, %v1412_v15  ;;  %vm1450_vm12 = vcmp.eq.f32.partialorder %v1449_v44, 8.507059e+37 }
 0x561   :  { %v1428_v22 = vmul.f32 %v1859_v17, %v1427_v3 }
 0x562   :  { %v1861_v51 = vpop.eup %1860  ;;  %v1414_v10 = vadd.f32 %v1857_v18, %v1413_v9  ;;  %v3384_v9 = vld [vmem:[#allocation63_spill] sm:$0xff] }
 0x563   :  { %v1441_v8 = vmul.f32 %v1861_v51, %v1409_v53  ;;  %v1429_v38 = vadd.f32 %v1859_v17, %v1428_v22  ;;  %v1863_v19 = vpop.eup %1862  ;;  %vm1446_vm9 = vweird.f32 %v1861_v51 }
 0x564   :  { %v1418_v20 = vsel %vm1417_vm5, %v1857_v18, %v1414_v10  ;;  %vm1447_vm11 = vmor %vm1445_vm10, %vm1446_vm9  ;;  %v1612_v18 = vld [vmem:[#allocation6] sm:$0xff] }
 0x565   :  { %v1442_v31 = vsub.f32 1.0, %v1441_v8  ;;  %v1423_v52 = vsel %vm1420_vm7, %v1422_v63, %v1418_v20  ;;  %v1433_v13 = vsel %vm1432_vm6, %v1859_v17, %v1429_v38 }
 0x566   :  { %v1438_v35 = vsel %vm1435_vm8, %v1437_v23, %v1433_v13  ;;  %v1457_v25 = vmul.f32 %v1863_v19, %v1423_v52 }
 0x567   :  { %v1456_v14 = vmul.f32 %v1438_v35, %v3065_v55  ;;  %v1443_v39 = vmul.f32 %v1861_v51, %v1442_v31  ;;  %v1627_v55 = vld [vmem:[#allocation6 + $0x78] sm:$0xff] }
 0x568   :  { %1632 = vmatpush.msrb.mxu0 %v1627_v55 }
 0x569   :  { %v3073_v37 = vadd.f32 %v1457_v25, %v1456_v14  ;;  %v1444_v34 = vadd.f32 %v1861_v51, %v1443_v39 }
 0x56a   :  { %1633 = vmatpush.msrb.mxu0 %v1626_v61 }
 0x56b   :  { %1864 = vtanh.f32 %v3073_v37  ;;  %v1448_v45 = vsel %vm1447_vm11, %v1861_v51, %v1444_v34 }
 0x56c   :  { %v1453_v57 = vsel %vm1450_vm12, %v1452_v29, %v1448_v45  ;;  %1634 = vmatpush.msrb.mxu0 %v1625_v62 }
 0x56e   :  { %1635 = vmatpush.msrb.mxu0 %v1624_v1 }
 0x570   :  { %1636 = vmatpush.msrb.mxu0 %v1623_v2 }
 0x571   :  { %v1865_v54 = vpop.eup %1864 }
 0x572   :  { %v1460_v58 = vmul.f32 %v1865_v54, %v1453_v57  ;;  %1637 = vmatpush.msrb.mxu0 %v1622_v4 }
 0x574   :  { %1481 = vmatmul.f32.vlgmr.msra.gmra.mxu0 %v1460_v58  ;;  %1501 = vmatmul.f32.vlgmr.msrb.gmra.mxu1 %v1460_v58 }
 0x575   :  { %1521 = vmatmul.f32.vlgmr.msrb.gmra.mxu2 %v1460_v58  ;;  %1541 = vmatmul.f32.vlgmr.msrb.gmra.mxu3 %v1460_v58 }
 0x576   :  { %1638 = vmatpush.msrb.mxu0 %v1621_v32 }
 0x578   :  { %1639 = vmatpush.msrb.mxu0 %v1620_v27 }
 0x57a   :  { %1640 = vmatpush.msrb.mxu0 %v1619_v47 }
 0x57c   :  { %1641 = vmatpush.msrb.mxu0 %v1618_v41 }
 0x57e   :  { %1642 = vmatpush.msrb.mxu0 %v1617_v11 }
 0x580   :  { %1643 = vmatpush.msrb.mxu0 %v1616_v7 }
 0x582   :  { %1644 = vmatpush.msrb.mxu0 %v1615_v21 }
 0x584   :  { %1645 = vmatpush.msrb.mxu0 %v1614_v48 }
 0x586   :  { %1646 = vmatpush.msrb.mxu0 %v1613_v59 }
 0x588   :  { %1647 = vmatpush.msrb.mxu0 %v1612_v18 }
 0x5f1   :  { %v1482_v16 = vpop.f32.mrf.mxu0  ;;  %v1502_v33 = vpop.f32.mrf.mxu1 }
 0x5f2   :  { %v1545_v36 = vadd.f32 %v1482_v16, %v3381_v50  ;;  %v1546_v49 = vadd.f32 %v1502_v33, %v3382_v46 }
 0x5f4   :  { %v1732_v26 = vmul.f32 -1.442695, %v1545_v36  ;;  %v1733_v43 = vmul.f32 -1.442695, %v1546_v49 }
 0x5f6   :  { %1866 = vpow2.f32 %v1732_v26 }
 0x5f7   :  { %1868 = vpow2.f32 %v1733_v43 }
 0x5f8   :  { %v1522_v28 = vpop.f32.mrf.mxu2  ;;  %v1542_v15 = vpop.f32.mrf.mxu3 }
 0x5f9   :  { %v1547_v53 = vadd.f32 %v1522_v28, %v3383_v60  ;;  %v1548_v6 = vadd.f32 %v1542_v15, %v3384_v9 }
 0x5fb   :  { %v1734_v24 = vmul.f32 -1.442695, %v1547_v53 }
 0x5fc   :  { %v1867_v12 = vpop.eup %1866 }
 0x5fd   :  { %v1869_v17 = vpop.eup %1868  ;;  %v1558_v42 = vadd.f32 1.0, %v1867_v12  ;;  %1870 = vpow2.f32 %v1734_v24 }
 0x5fe   :  { %v1559_v40 = vadd.f32 1.0, %v1869_v17 }
 0x5ff   :  { %1872 = vrcp.f32 %v1558_v42  ;;  %v1572_v63 = vand.u32 2147483648, %v1558_v42  ;;  %v1570_v20 = vand.u32 2147483647, %v1558_v42  ;;  %vm1566_vm15 = vweird.f32 %v1558_v42 }
 0x600   :  { %1874 = vrcp.f32 %v1559_v40  ;;  %v1587_v38 = vand.u32 2147483648, %v1559_v40  ;;  %v1585_v31 = vand.u32 2147483647, %v1559_v40  ;;  %vm1581_vm0 = vweird.f32 %v1559_v40 }
 0x601   :  { %v1573_v25 = vor.u32 1.1754944e-38, %v1572_v63  ;;  %vm1571_vm3 = vcmp.eq.f32.partialorder %v1570_v20, 8.507059e+37 }
 0x602   :  { %v1588_v39 = vor.u32 1.1754944e-38, %v1587_v38  ;;  %vm1586_vm4 = vcmp.eq.f32.partialorder %v1585_v31, 8.507059e+37 }
 0x603   :  { %v1871_v3 = vpop.eup %1870 }
 0x604   :  { %v1560_v30 = vadd.f32 1.0, %v1871_v3 }
 0x605   :  { %v1873_v56 = vpop.eup %1872 }
 0x606   :  { %v1875_v22 = vpop.eup %1874  ;;  %v1562_v5 = vmul.f32 %v1873_v56, %v1558_v42  ;;  %1876 = vrcp.f32 %v1560_v30  ;;  %vm1567_vm13 = vweird.f32 %v1873_v56  ;;  %v1602_v1 = vand.u32 2147483648, %v1560_v30 }
 0x607   :  { %v1577_v51 = vmul.f32 %v1875_v22, %v1559_v40  ;;  %1878 = vtanh.f32 %v1548_v6  ;;  %vm1582_vm14 = vweird.f32 %v1875_v22  ;;  %vm1568_vm1 = vmor %vm1566_vm15, %vm1567_vm13  ;;  %vm1596_vm6 = vweird.f32 %v1560_v30 }
 0x608   :  { %v1563_v10 = vsub.f32 1.0, %v1562_v5  ;;  %vm1583_vm2 = vmor %vm1581_vm0, %vm1582_vm14  ;;  %v1600_v2 = vand.u32 2147483647, %v1560_v30  ;;  %v1603_v32 = vor.u32 1.1754944e-38, %v1602_v1 }
 0x609   :  { %v1578_v8 = vsub.f32 1.0, %v1577_v51 }
 0x60a   :  { %v1564_v23 = vmul.f32 %v1873_v56, %v1563_v10  ;;  %vm1601_vm8 = vcmp.eq.f32.partialorder %v1600_v2, 8.507059e+37 }
 0x60b   :  { %v1579_v19 = vmul.f32 %v1875_v22, %v1578_v8 }
 0x60c   :  { %v1877_v52 = vpop.eup %1876  ;;  %v1565_v13 = vadd.f32 %v1873_v56, %v1564_v23 }
 0x60d   :  { %v1592_v35 = vmul.f32 %v1877_v52, %v1560_v30  ;;  %v1580_v14 = vadd.f32 %v1875_v22, %v1579_v19  ;;  %v1879_v0 = vpop.eup %1878  ;;  %vm1597_vm5 = vweird.f32 %v1877_v52 }
 0x60e   :  { %v1569_v34 = vsel %vm1568_vm1, %v1873_v56, %v1565_v13  ;;  %vm1598_vm7 = vmor %vm1596_vm6, %vm1597_vm5 }
 0x60f   :  { %v1593_v44 = vsub.f32 1.0, %v1592_v35  ;;  %v1574_v45 = vsel %vm1571_vm3, %v1573_v25, %v1569_v34  ;;  %v1584_v29 = vsel %vm1583_vm2, %v1875_v22, %v1580_v14 }
 0x610   :  { %v1589_v54 = vsel %vm1586_vm4, %v1588_v39, %v1584_v29  ;;  %v1608_v57 = vmul.f32 %v1879_v0, %v1574_v45 }
 0x611   :  { %v1607_v58 = vmul.f32 %v1589_v54, %v3073_v37  ;;  %v1594_v55 = vmul.f32 %v1877_v52, %v1593_v44  ;;  %v1753_v37 = vld [vmem:[%s3091_s4] ss:$0 sm:$0xff] }
 0x613   :  { %v1609_v61 = vadd.f32 %v1608_v57, %v1607_v58  ;;  %v1595_v62 = vadd.f32 %v1877_v52, %v1594_v55 }
 0x615   :  { %1880 = vtanh.f32 %v1609_v61  ;;  %v1599_v4 = vsel %vm1598_vm7, %v1877_v52, %v1595_v62 }
 0x616   :  { %v1604_v47 = vsel %vm1601_vm8, %v1603_v32, %v1599_v4 }
 0x61b   :  { %v1881_v27 = vpop.eup %1880 }
 0x61c   :  { %v1611_v41 = vmul.f32 %v1881_v27, %v1604_v47 }
 0x61e   :  { %1648 = vmatmul.f32.vlgmr.msrb.gmra.mxu0 %v1611_v41 }
 0x69b   :  { %v1649_v16 = vpop.f32.mrf.mxu0 }
 0x69c   :  { %v1650_v33 = vadd.f32 %v1753_v37, %v1649_v16 }
 0x69e   :  { %1652 = vst [vmem:[#allocation8] sm:$0xff] %v1650_v33 }
 0x69f   :  { %1663 = dma.vmem_to_hbm [thread:$0]  %s1659_s11, 128, %s1661_s14, [#allocation5]  }
 0x6a0   :  { %2022 = dma.done.wait [#allocation5], 128  }
 0x6a1   :  { %2023 = vsyncadd [#allocation5], 4294967168 }
 0x6a2   :  { %1668 = vsyncpa [#allocation4], 1 }
 0x6a3   :  { %1669 = vsyncpa [#allocation7], 1 }
 0x6a4   :  { %1670 = vsyncpa [#allocation5], 1 }

</bundles_post_ra>
